<compile_context>
chip_gen: v7x
topology: tpu7x:2x2x1
jax: 0.10.0
libtpu: 0.0.40
codegen_flags: <defaults>
</compile_context>

<pallas_src>
import functools

import jax
import jax.numpy as jnp
from jax import lax
from jax.experimental import pallas as pl
from jax.experimental.pallas import tpu as pltpu

_EPS = 1e-6


def _nmf2d_kernel(x_ref, bases_ref, out_ref, cat_ref, *, steps: int,
                  inv_t: float, mxu_dtype):
    """One batch element (leading batch dim squeezed).

    x_ref:     (D, N)    latent dim D on sublanes, spatial N lane-dense.
    bases_ref: (R, D)    bases stored transposed (R on sublanes).
    out_ref:   (D, N)
    cat_ref:   (D+R, N)  persistent scratch in the MXU operand dtype:
                           rows [0:D]   = x       (written once)
                           rows [D:D+R] = coef^T  (rewritten each MU step)
                         -> numer_b / ctc come from ONE fused matmul.
    coef is kept transposed as (R, N); all elementwise math stays f32.
    """
    f32 = jnp.float32
    mxu = mxu_dtype if mxu_dtype is not None else f32
    D, N = x_ref.shape
    R, _ = bases_ref.shape

    def mm(eq, a, b):
        return jnp.einsum(eq, a.astype(mxu), b.astype(mxu),
                          preferred_element_type=f32)

    # Hoisted one-time cast of the big operand: only the mxu-dtype copy of x
    # is kept (in the scratch); no f32 copy survives.
    cat_ref[0:D, :] = x_ref[...].astype(cat_ref.dtype)
    bases = bases_ref[...].astype(f32)            # (R, D), f32 for MU math

    def x_op():
        return cat_ref[0:D, :]                    # (D, N), already mxu dtype

    # ---- local_inference init: coef^T = softmax_R(inv_t * B^T x) -> (R, N)
    prod0 = mm('rd,dn->rn', bases, x_op())        # unscaled B^T x (reused below)
    m = jnp.max(prod0, axis=0, keepdims=True)
    e = jnp.exp(inv_t * (prod0 - m))
    coef = e / jnp.sum(e, axis=0, keepdims=True)  # exact division (runs once)

    def coef_update(bases, coef, numer_c, exact=False):
        # btb = B^T B is symmetric, so denom_c^T = btb @ coef^T.
        btb = mm('rd,sd->rs', bases, bases)              # (R, R)
        denom_c = mm('rs,sn->rn', btb, coef) + _EPS      # (R, N)
        if exact:
            return coef * numer_c / denom_c
        return coef * numer_c * pl.reciprocal(denom_c, approx=True)

    def bases_update(bases, coef):
        # Shared-LHS fusion: numer_b = coef^T x^T and ctc = coef^T coef both
        # have LHS coef^T and contract over N -> one matmul against cat_ref.
        cat_ref[D:D + R, :] = coef.astype(cat_ref.dtype)
        fused = mm('rn,mn->rm', coef, cat_ref[...])      # (R, D+R)
        numer_b = fused[:, 0:D]                          # (R, D)
        ctc = fused[:, D:D + R]                          # (R, R), symmetric
        denom_b = mm('rs,sd->rd', ctc, bases) + _EPS     # (R, D)
        return bases * numer_b * pl.reciprocal(denom_b, approx=True)

    def mu_step(bases, coef, numer_c):
        coef = coef_update(bases, coef, numer_c)
        bases = bases_update(bases, coef)
        return bases, coef

    # ---- Multiplicative Update iterations (NMF2D.local_step).
    if steps >= 1:
        # First iteration's coef numerator equals the UNSCALED pre-softmax
        # product (bases unchanged until after this update).
        bases, coef = mu_step(bases, coef, prod0)
    if steps >= 2:
        def body(_, carry):
            b, c = carry
            return mu_step(b, c, mm('rd,dn->rn', b, x_op()))
        # Static trip count (5-6); unroll for cross-iteration LLO scheduling.
        bases, coef = lax.fori_loop(1, steps, body, (bases, coef), unroll=True)

    # ---- compute_coef: one extra coef update, exact division for parity.
    coef = coef_update(bases, coef, mm('rd,dn->rn', bases, x_op()), exact=True)

    # ---- reconstruction: x_hat = B @ coef^T -> (D, N), lane-dense output.
    out_ref[...] = mm('rd,rn->dn', bases, coef).astype(out_ref.dtype)


def nmf2d_pallas(x_bdn, bases_rd, *, steps: int, inv_t: float,
                 mxu_dtype=jnp.bfloat16):
    """x_bdn: (BS, D, N), bases_rd: (BS, R, D)  ->  (BS, D, N)."""
    BS, D, N = x_bdn.shape
    _, R, _ = bases_rd.shape
    cat_dtype = mxu_dtype if mxu_dtype is not None else jnp.float32

    # VMEM budget: double-buffered x/out blocks + scratch + in-kernel temps,
    # capped at 75% of physical VMEM (v7x ~48 MiB, v5e/v6e ~96 MiB).
    blk = D * N * x_bdn.dtype.itemsize
    cat_bytes = (D + R) * N * jnp.dtype(cat_dtype).itemsize
    temps = 12 * R * N * 4 + 6 * R * D * 4
    vmem_est = 4 * blk + cat_bytes + temps + (4 << 20)
    cap = 64 << 20                                  # conservative fallback
    try:
        cap = int(getattr(pltpu.get_tpu_info(), "vmem_capacity_bytes", cap))
    except Exception:
        pass
    vmem_limit = int(min(max(vmem_est, 4 << 20), (cap * 3) // 4))

    kern = functools.partial(_nmf2d_kernel, steps=int(steps),
                             inv_t=float(inv_t), mxu_dtype=mxu_dtype)
    return pl.pallas_call(
        kern,
        out_shape=jax.ShapeDtypeStruct((BS, D, N), x_bdn.dtype),
        grid_spec=pltpu.PrefetchScalarGridSpec(
            num_scalar_prefetch=0,
            grid=(BS,),
            in_specs=[
                pl.BlockSpec((pl.Squeezed(), D, N), lambda b: (b, 0, 0)),
                pl.BlockSpec((pl.Squeezed(), R, D), lambda b: (b, 0, 0)),
            ],
            out_specs=pl.BlockSpec((pl.Squeezed(), D, N), lambda b: (b, 0, 0)),
            scratch_shapes=[pltpu.VMEM((D + R, N), cat_dtype)],
        ),
        compiler_params=pltpu.CompilerParams(
            dimension_semantics=(pltpu.PARALLEL,),
            vmem_limit_bytes=vmem_limit,
        ),
    )(x_bdn, bases_rd)


def matrix_decomposition_2d_forward(
    x,                       # (B, C, H, W) float32, NCHW like the PyTorch module
    key,
    MD_S: int = 1,
    MD_R: int = 16,
    train_steps: int = 6,
    eval_steps: int = 7,
    inv_t: float = 100.0,    # base-class default; mmseg NMF2D uses inv_t=1
    training: bool = False,
    mxu_dtype=jnp.bfloat16,  # MXU-operand dtype only; elementwise math is f32
):
    B, C, H, W = x.shape
    D = C // MD_S
    N = H * W

    # x.view(B*S, D, N)
    x_r = x.reshape(B * MD_S, D, N)

    # rand_init=True path of _build_bases (NMF2D): uniform [0,1), L2-normalized
    # over D, generated directly in the transposed (BS, R, D) orientation.
    # (Deterministic from `key`; not bitwise-identical to torch's RNG.)
    bases = jax.random.uniform(key, (B * MD_S, MD_R, D), dtype=x.dtype)
    norm = jnp.sqrt(jnp.sum(bases * bases, axis=-1, keepdims=True))
    bases = bases / jnp.maximum(norm, 1e-12)      # == F.normalize(bases, dim=1)

    steps = train_steps if training else eval_steps
    out = nmf2d_pallas(x_r, bases, steps=steps, inv_t=inv_t, mxu_dtype=mxu_dtype)
    return out.reshape(B, C, H, W)


if __name__ == "__main__":
    key = jax.random.PRNGKey(0)
    k_x, k_bases = jax.random.split(key)

    # Small shapes consistent with the module: B=2, C=32, H=W=16, S=1, R=16.
    B, C, H, W = 2, 32, 16, 16
    # NMF expects non-negative input (ham_head applies ReLU before this block).
    x = jax.random.uniform(k_x, (B, C, H, W), dtype=jnp.float32)

    out = matrix_decomposition_2d_forward(
        x, k_bases, MD_S=1, MD_R=16, train_steps=6, eval_steps=7,
        inv_t=100.0, training=False,
    )
    out = jax.block_until_ready(out)
    assert out.shape == (B, C, H, W)
    assert bool(jnp.all(jnp.isfinite(out)))
    print("KERNEL_OK")
</pallas_src>

<mosaic_0001>
module attributes {stable_mosaic.version = 11 : i64} {
  func.func @_nmf2d_kernel(%arg0: i32, %arg1: memref<1x32x256xf32, #tpu.memory_space<vmem>>, %arg2: memref<1x16x32xf32, #tpu.memory_space<vmem>>, %arg3: memref<1x32x256xf32, #tpu.memory_space<vmem>>, %arg4: memref<48x256xbf16, #tpu.memory_space<vmem>>) attributes {dimension_semantics = [#tpu.dimension_semantics<parallel>], iteration_bounds = array<i64: 2>, scalar_prefetch = 0 : i64, scratch_operands = 1 : i64, tpu.core_type = #tpu.core_type<tc>, window_params = [{transform_indices = @transform_0, window_bounds = array<i64: 1, 32, 256>}, {transform_indices = @transform_1, window_bounds = array<i64: 1, 16, 32>}, {transform_indices = @transform_2, window_bounds = array<i64: 1, 32, 256>}]} {
    %c0 = arith.constant 0 : index
    %c0_0 = arith.constant 0 : index
    %c0_1 = arith.constant 0 : index
    %0 = vector.load %arg1[%c0, %c0_0, %c0_1] : memref<1x32x256xf32, #tpu.memory_space<vmem>>, vector<1x32x256xf32>
    %1 = vector.shape_cast %0 : vector<1x32x256xf32> to vector<32x256xf32>
    %2 = arith.truncf %1 : vector<32x256xf32> to vector<32x256xbf16>
    %c0_2 = arith.constant 0 : index
    %c0_3 = arith.constant 0 : index
    %3 = vector.load %arg4[%c0_2, %c0_3] : memref<48x256xbf16, #tpu.memory_space<vmem>>, vector<32x256xbf16>
    tpu.vector_store %arg4[%c0_2, %c0_3], %2 {strides = array<i32>} : memref<48x256xbf16, #tpu.memory_space<vmem>>, vector<32x256xbf16>,
    %c0_4 = arith.constant 0 : index
    %c0_5 = arith.constant 0 : index
    %c0_6 = arith.constant 0 : index
    %4 = vector.load %arg2[%c0_4, %c0_5, %c0_6] : memref<1x16x32xf32, #tpu.memory_space<vmem>>, vector<1x16x32xf32>
    %5 = vector.shape_cast %4 : vector<1x16x32xf32> to vector<16x32xf32>
    %c0_7 = arith.constant 0 : index
    %c0_8 = arith.constant 0 : index
    %6 = vector.load %arg4[%c0_7, %c0_8] : memref<48x256xbf16, #tpu.memory_space<vmem>>, vector<32x256xbf16>
    %7 = arith.truncf %5 : vector<16x32xf32> to vector<16x32xbf16>
    "tpu.trace_start"() <{level = 10 : i32, message = "rd,dn->rn"}> : () -> ()
    %cst = arith.constant dense<0.000000e+00> : vector<16x256xf32>
    %8 = tpu.matmul %7, %6, %cst {dimension_numbers = #tpu.dot_dimension_numbers<[1], [0], [0], [1], [0, 0, 1, 1], [], []>} : vector<16x32xbf16>, vector<32x256xbf16>, vector<16x256xf32> -> vector<16x256xf32>
    "tpu.trace_stop"() : () -> ()
    %cst_9 = arith.constant dense<0xFF800000> : vector<256xf32>
    %9 = vector.multi_reduction <maximumf>, %8, %cst_9 [0] : vector<16x256xf32> to vector<256xf32>
    %10 = vector.shape_cast %9 : vector<256xf32> to vector<1x256xf32>
    %11 = vector.broadcast %10 : vector<1x256xf32> to vector<16x256xf32>
    %12 = arith.subf %8, %11 : vector<16x256xf32>
    %cst_10 = arith.constant 1.000000e+02 : f32
    %13 = vector.broadcast %cst_10 : f32 to vector<16x256xf32>
    %14 = arith.mulf %13, %12 : vector<16x256xf32>
    %15 = math.exp %14 : vector<16x256xf32>
    %cst_11 = arith.constant dense<0.000000e+00> : vector<256xf32>
    %16 = vector.multi_reduction <add>, %15, %cst_11 [0] : vector<16x256xf32> to vector<256xf32>
    %17 = vector.shape_cast %16 : vector<256xf32> to vector<1x256xf32>
    %18 = vector.broadcast %17 : vector<1x256xf32> to vector<16x256xf32>
    %19 = arith.divf %15, %18 : vector<16x256xf32>
    %20 = arith.truncf %5 : vector<16x32xf32> to vector<16x32xbf16>
    %21 = arith.truncf %5 : vector<16x32xf32> to vector<16x32xbf16>
    "tpu.trace_start"() <{level = 10 : i32, message = "rd,sd->rs"}> : () -> ()
    %cst_12 = arith.constant dense<0.000000e+00> : vector<16x16xf32>
    %22 = tpu.matmul %20, %21, %cst_12 {dimension_numbers = #tpu.dot_dimension_numbers<[1], [1], [0], [0], [0, 0, 1, 0], [], []>} : vector<16x32xbf16>, vector<16x32xbf16>, vector<16x16xf32> -> vector<16x16xf32>
    "tpu.trace_stop"() : () -> ()
    %23 = arith.truncf %22 : vector<16x16xf32> to vector<16x16xbf16>
    %24 = arith.truncf %19 : vector<16x256xf32> to vector<16x256xbf16>
    "tpu.trace_start"() <{level = 10 : i32, message = "rs,sn->rn"}> : () -> ()
    %cst_13 = arith.constant dense<0.000000e+00> : vector<16x256xf32>
    %25 = tpu.matmul %23, %24, %cst_13 {dimension_numbers = #tpu.dot_dimension_numbers<[1], [0], [0], [1], [0, 0, 1, 1], [], []>} : vector<16x16xbf16>, vector<16x256xbf16>, vector<16x256xf32> -> vector<16x256xf32>
    "tpu.trace_stop"() : () -> ()
    %cst_14 = arith.constant 9.99999997E-7 : f32
    %26 = vector.broadcast %cst_14 : f32 to vector<16x256xf32>
    %27 = arith.addf %25, %26 : vector<16x256xf32>
    %28 = arith.mulf %19, %8 : vector<16x256xf32>
    %29 = tpu.reciprocal %27 {approx = true} : vector<16x256xf32> -> vector<16x256xf32>
    %30 = arith.mulf %28, %29 : vector<16x256xf32>
    %31 = arith.truncf %30 : vector<16x256xf32> to vector<16x256xbf16>
    %c32 = arith.constant 32 : index
    %c0_15 = arith.constant 0 : index
    %32 = vector.load %arg4[%c32, %c0_15] : memref<48x256xbf16, #tpu.memory_space<vmem>>, vector<16x256xbf16>
    tpu.vector_store %arg4[%c32, %c0_15], %31 {strides = array<i32>} : memref<48x256xbf16, #tpu.memory_space<vmem>>, vector<16x256xbf16>,
    %c0_16 = arith.constant 0 : index
    %c0_17 = arith.constant 0 : index
    %33 = vector.load %arg4[%c0_16, %c0_17] : memref<48x256xbf16, #tpu.memory_space<vmem>>, vector<48x256xbf16>
    %34 = arith.truncf %30 : vector<16x256xf32> to vector<16x256xbf16>
    "tpu.trace_start"() <{level = 10 : i32, message = "rn,mn->rm"}> : () -> ()
    %cst_18 = arith.constant dense<0.000000e+00> : vector<16x48xf32>
    %35 = tpu.matmul %34, %33, %cst_18 {dimension_numbers = #tpu.dot_dimension_numbers<[1], [1], [0], [0], [0, 0, 1, 0], [], []>} : vector<16x256xbf16>, vector<48x256xbf16>, vector<16x48xf32> -> vector<16x48xf32>
    "tpu.trace_stop"() : () -> ()
    %36 = vector.extract_strided_slice %35 {offsets = [0, 0], sizes = [16, 32], strides = [1, 1]} : vector<16x48xf32> to vector<16x32xf32>
    %37 = vector.extract_strided_slice %35 {offsets = [0, 32], sizes = [16, 16], strides = [1, 1]} : vector<16x48xf32> to vector<16x16xf32>
    %38 = arith.truncf %37 : vector<16x16xf32> to vector<16x16xbf16>
    %39 = arith.truncf %5 : vector<16x32xf32> to vector<16x32xbf16>
    "tpu.trace_start"() <{level = 10 : i32, message = "rs,sd->rd"}> : () -> ()
    %cst_19 = arith.constant dense<0.000000e+00> : vector<16x32xf32>
    %40 = tpu.matmul %38, %39, %cst_19 {dimension_numbers = #tpu.dot_dimension_numbers<[1], [0], [0], [1], [0, 0, 1, 1], [], []>} : vector<16x16xbf16>, vector<16x32xbf16>, vector<16x32xf32> -> vector<16x32xf32>
    "tpu.trace_stop"() : () -> ()
    %cst_20 = arith.constant 9.99999997E-7 : f32
    %41 = vector.broadcast %cst_20 : f32 to vector<16x32xf32>
    %42 = arith.addf %40, %41 : vector<16x32xf32>
    %43 = arith.mulf %5, %36 : vector<16x32xf32>
    %44 = tpu.reciprocal %42 {approx = true} : vector<16x32xf32> -> vector<16x32xf32>
    %45 = arith.mulf %43, %44 : vector<16x32xf32>
    %c0_i32 = arith.constant 0 : i32
    %c0_21 = arith.constant 0 : index
    %c0_22 = arith.constant 0 : index
    %46 = vector.load %arg4[%c0_21, %c0_22] : memref<48x256xbf16, #tpu.memory_space<vmem>>, vector<32x256xbf16>
    %47 = arith.truncf %45 : vector<16x32xf32> to vector<16x32xbf16>
    "tpu.trace_start"() <{level = 10 : i32, message = "rd,dn->rn"}> : () -> ()
    %cst_23 = arith.constant dense<0.000000e+00> : vector<16x256xf32>
    %48 = tpu.matmul %47, %46, %cst_23 {dimension_numbers = #tpu.dot_dimension_numbers<[1], [0], [0], [1], [0, 0, 1, 1], [], []>} : vector<16x32xbf16>, vector<32x256xbf16>, vector<16x256xf32> -> vector<16x256xf32>
    "tpu.trace_stop"() : () -> ()
    %49 = arith.truncf %45 : vector<16x32xf32> to vector<16x32xbf16>
    %50 = arith.truncf %45 : vector<16x32xf32> to vector<16x32xbf16>
    "tpu.trace_start"() <{level = 10 : i32, message = "rd,sd->rs"}> : () -> ()
    %cst_24 = arith.constant dense<0.000000e+00> : vector<16x16xf32>
    %51 = tpu.matmul %49, %50, %cst_24 {dimension_numbers = #tpu.dot_dimension_numbers<[1], [1], [0], [0], [0, 0, 1, 0], [], []>} : vector<16x32xbf16>, vector<16x32xbf16>, vector<16x16xf32> -> vector<16x16xf32>
    "tpu.trace_stop"() : () -> ()
    %52 = arith.truncf %51 : vector<16x16xf32> to vector<16x16xbf16>
    %53 = arith.truncf %30 : vector<16x256xf32> to vector<16x256xbf16>
    "tpu.trace_start"() <{level = 10 : i32, message = "rs,sn->rn"}> : () -> ()
    %cst_25 = arith.constant dense<0.000000e+00> : vector<16x256xf32>
    %54 = tpu.matmul %52, %53, %cst_25 {dimension_numbers = #tpu.dot_dimension_numbers<[1], [0], [0], [1], [0, 0, 1, 1], [], []>} : vector<16x16xbf16>, vector<16x256xbf16>, vector<16x256xf32> -> vector<16x256xf32>
    "tpu.trace_stop"() : () -> ()
    %cst_26 = arith.constant 9.99999997E-7 : f32
    %55 = vector.broadcast %cst_26 : f32 to vector<16x256xf32>
    %56 = arith.addf %54, %55 : vector<16x256xf32>
    %57 = arith.mulf %30, %48 : vector<16x256xf32>
    %58 = tpu.reciprocal %56 {approx = true} : vector<16x256xf32> -> vector<16x256xf32>
    %59 = arith.mulf %57, %58 : vector<16x256xf32>
    %60 = arith.truncf %59 : vector<16x256xf32> to vector<16x256xbf16>
    %c32_27 = arith.constant 32 : index
    %c0_28 = arith.constant 0 : index
    %61 = vector.load %arg4[%c32_27, %c0_28] : memref<48x256xbf16, #tpu.memory_space<vmem>>, vector<16x256xbf16>
    tpu.vector_store %arg4[%c32_27, %c0_28], %60 {strides = array<i32>} : memref<48x256xbf16, #tpu.memory_space<vmem>>, vector<16x256xbf16>,
    %c0_29 = arith.constant 0 : index
    %c0_30 = arith.constant 0 : index
    %62 = vector.load %arg4[%c0_29, %c0_30] : memref<48x256xbf16, #tpu.memory_space<vmem>>, vector<48x256xbf16>
    %63 = arith.truncf %59 : vector<16x256xf32> to vector<16x256xbf16>
    "tpu.trace_start"() <{level = 10 : i32, message = "rn,mn->rm"}> : () -> ()
    %cst_31 = arith.constant dense<0.000000e+00> : vector<16x48xf32>
    %64 = tpu.matmul %63, %62, %cst_31 {dimension_numbers = #tpu.dot_dimension_numbers<[1], [1], [0], [0], [0, 0, 1, 0], [], []>} : vector<16x256xbf16>, vector<48x256xbf16>, vector<16x48xf32> -> vector<16x48xf32>
    "tpu.trace_stop"() : () -> ()
    %65 = vector.extract_strided_slice %64 {offsets = [0, 0], sizes = [16, 32], strides = [1, 1]} : vector<16x48xf32> to vector<16x32xf32>
    %66 = vector.extract_strided_slice %64 {offsets = [0, 32], sizes = [16, 16], strides = [1, 1]} : vector<16x48xf32> to vector<16x16xf32>
    %67 = arith.truncf %66 : vector<16x16xf32> to vector<16x16xbf16>
    %68 = arith.truncf %45 : vector<16x32xf32> to vector<16x32xbf16>
    "tpu.trace_start"() <{level = 10 : i32, message = "rs,sd->rd"}> : () -> ()
    %cst_32 = arith.constant dense<0.000000e+00> : vector<16x32xf32>
    %69 = tpu.matmul %67, %68, %cst_32 {dimension_numbers = #tpu.dot_dimension_numbers<[1], [0], [0], [1], [0, 0, 1, 1], [], []>} : vector<16x16xbf16>, vector<16x32xbf16>, vector<16x32xf32> -> vector<16x32xf32>
    "tpu.trace_stop"() : () -> ()
    %cst_33 = arith.constant 9.99999997E-7 : f32
    %70 = vector.broadcast %cst_33 : f32 to vector<16x32xf32>
    %71 = arith.addf %69, %70 : vector<16x32xf32>
    %72 = arith.mulf %45, %65 : vector<16x32xf32>
    %73 = tpu.reciprocal %71 {approx = true} : vector<16x32xf32> -> vector<16x32xf32>
    %74 = arith.mulf %72, %73 : vector<16x32xf32>
    %c1_i32 = arith.constant 1 : i32
    %c0_34 = arith.constant 0 : index
    %c0_35 = arith.constant 0 : index
    %75 = vector.load %arg4[%c0_34, %c0_35] : memref<48x256xbf16, #tpu.memory_space<vmem>>, vector<32x256xbf16>
    %76 = arith.truncf %74 : vector<16x32xf32> to vector<16x32xbf16>
    "tpu.trace_start"() <{level = 10 : i32, message = "rd,dn->rn"}> : () -> ()
    %cst_36 = arith.constant dense<0.000000e+00> : vector<16x256xf32>
    %77 = tpu.matmul %76, %75, %cst_36 {dimension_numbers = #tpu.dot_dimension_numbers<[1], [0], [0], [1], [0, 0, 1, 1], [], []>} : vector<16x32xbf16>, vector<32x256xbf16>, vector<16x256xf32> -> vector<16x256xf32>
    "tpu.trace_stop"() : () -> ()
    %78 = arith.truncf %74 : vector<16x32xf32> to vector<16x32xbf16>
    %79 = arith.truncf %74 : vector<16x32xf32> to vector<16x32xbf16>
    "tpu.trace_start"() <{level = 10 : i32, message = "rd,sd->rs"}> : () -> ()
    %cst_37 = arith.constant dense<0.000000e+00> : vector<16x16xf32>
    %80 = tpu.matmul %78, %79, %cst_37 {dimension_numbers = #tpu.dot_dimension_numbers<[1], [1], [0], [0], [0, 0, 1, 0], [], []>} : vector<16x32xbf16>, vector<16x32xbf16>, vector<16x16xf32> -> vector<16x16xf32>
    "tpu.trace_stop"() : () -> ()
    %81 = arith.truncf %80 : vector<16x16xf32> to vector<16x16xbf16>
    %82 = arith.truncf %59 : vector<16x256xf32> to vector<16x256xbf16>
    "tpu.trace_start"() <{level = 10 : i32, message = "rs,sn->rn"}> : () -> ()
    %cst_38 = arith.constant dense<0.000000e+00> : vector<16x256xf32>
    %83 = tpu.matmul %81, %82, %cst_38 {dimension_numbers = #tpu.dot_dimension_numbers<[1], [0], [0], [1], [0, 0, 1, 1], [], []>} : vector<16x16xbf16>, vector<16x256xbf16>, vector<16x256xf32> -> vector<16x256xf32>
    "tpu.trace_stop"() : () -> ()
    %cst_39 = arith.constant 9.99999997E-7 : f32
    %84 = vector.broadcast %cst_39 : f32 to vector<16x256xf32>
    %85 = arith.addf %83, %84 : vector<16x256xf32>
    %86 = arith.mulf %59, %77 : vector<16x256xf32>
    %87 = tpu.reciprocal %85 {approx = true} : vector<16x256xf32> -> vector<16x256xf32>
    %88 = arith.mulf %86, %87 : vector<16x256xf32>
    %89 = arith.truncf %88 : vector<16x256xf32> to vector<16x256xbf16>
    %c32_40 = arith.constant 32 : index
    %c0_41 = arith.constant 0 : index
    %90 = vector.load %arg4[%c32_40, %c0_41] : memref<48x256xbf16, #tpu.memory_space<vmem>>, vector<16x256xbf16>
    tpu.vector_store %arg4[%c32_40, %c0_41], %89 {strides = array<i32>} : memref<48x256xbf16, #tpu.memory_space<vmem>>, vector<16x256xbf16>,
    %c0_42 = arith.constant 0 : index
    %c0_43 = arith.constant 0 : index
    %91 = vector.load %arg4[%c0_42, %c0_43] : memref<48x256xbf16, #tpu.memory_space<vmem>>, vector<48x256xbf16>
    %92 = arith.truncf %88 : vector<16x256xf32> to vector<16x256xbf16>
    "tpu.trace_start"() <{level = 10 : i32, message = "rn,mn->rm"}> : () -> ()
    %cst_44 = arith.constant dense<0.000000e+00> : vector<16x48xf32>
    %93 = tpu.matmul %92, %91, %cst_44 {dimension_numbers = #tpu.dot_dimension_numbers<[1], [1], [0], [0], [0, 0, 1, 0], [], []>} : vector<16x256xbf16>, vector<48x256xbf16>, vector<16x48xf32> -> vector<16x48xf32>
    "tpu.trace_stop"() : () -> ()
    %94 = vector.extract_strided_slice %93 {offsets = [0, 0], sizes = [16, 32], strides = [1, 1]} : vector<16x48xf32> to vector<16x32xf32>
    %95 = vector.extract_strided_slice %93 {offsets = [0, 32], sizes = [16, 16], strides = [1, 1]} : vector<16x48xf32> to vector<16x16xf32>
    %96 = arith.truncf %95 : vector<16x16xf32> to vector<16x16xbf16>
    %97 = arith.truncf %74 : vector<16x32xf32> to vector<16x32xbf16>
    "tpu.trace_start"() <{level = 10 : i32, message = "rs,sd->rd"}> : () -> ()
    %cst_45 = arith.constant dense<0.000000e+00> : vector<16x32xf32>
    %98 = tpu.matmul %96, %97, %cst_45 {dimension_numbers = #tpu.dot_dimension_numbers<[1], [0], [0], [1], [0, 0, 1, 1], [], []>} : vector<16x16xbf16>, vector<16x32xbf16>, vector<16x32xf32> -> vector<16x32xf32>
    "tpu.trace_stop"() : () -> ()
    %cst_46 = arith.constant 9.99999997E-7 : f32
    %99 = vector.broadcast %cst_46 : f32 to vector<16x32xf32>
    %100 = arith.addf %98, %99 : vector<16x32xf32>
    %101 = arith.mulf %74, %94 : vector<16x32xf32>
    %102 = tpu.reciprocal %100 {approx = true} : vector<16x32xf32> -> vector<16x32xf32>
    %103 = arith.mulf %101, %102 : vector<16x32xf32>
    %c2_i32 = arith.constant 2 : i32
    %c0_47 = arith.constant 0 : index
    %c0_48 = arith.constant 0 : index
    %104 = vector.load %arg4[%c0_47, %c0_48] : memref<48x256xbf16, #tpu.memory_space<vmem>>, vector<32x256xbf16>
    %105 = arith.truncf %103 : vector<16x32xf32> to vector<16x32xbf16>
    "tpu.trace_start"() <{level = 10 : i32, message = "rd,dn->rn"}> : () -> ()
    %cst_49 = arith.constant dense<0.000000e+00> : vector<16x256xf32>
    %106 = tpu.matmul %105, %104, %cst_49 {dimension_numbers = #tpu.dot_dimension_numbers<[1], [0], [0], [1], [0, 0, 1, 1], [], []>} : vector<16x32xbf16>, vector<32x256xbf16>, vector<16x256xf32> -> vector<16x256xf32>
    "tpu.trace_stop"() : () -> ()
    %107 = arith.truncf %103 : vector<16x32xf32> to vector<16x32xbf16>
    %108 = arith.truncf %103 : vector<16x32xf32> to vector<16x32xbf16>
    "tpu.trace_start"() <{level = 10 : i32, message = "rd,sd->rs"}> : () -> ()
    %cst_50 = arith.constant dense<0.000000e+00> : vector<16x16xf32>
    %109 = tpu.matmul %107, %108, %cst_50 {dimension_numbers = #tpu.dot_dimension_numbers<[1], [1], [0], [0], [0, 0, 1, 0], [], []>} : vector<16x32xbf16>, vector<16x32xbf16>, vector<16x16xf32> -> vector<16x16xf32>
    "tpu.trace_stop"() : () -> ()
    %110 = arith.truncf %109 : vector<16x16xf32> to vector<16x16xbf16>
    %111 = arith.truncf %88 : vector<16x256xf32> to vector<16x256xbf16>
    "tpu.trace_start"() <{level = 10 : i32, message = "rs,sn->rn"}> : () -> ()
    %cst_51 = arith.constant dense<0.000000e+00> : vector<16x256xf32>
    %112 = tpu.matmul %110, %111, %cst_51 {dimension_numbers = #tpu.dot_dimension_numbers<[1], [0], [0], [1], [0, 0, 1, 1], [], []>} : vector<16x16xbf16>, vector<16x256xbf16>, vector<16x256xf32> -> vector<16x256xf32>
    "tpu.trace_stop"() : () -> ()
    %cst_52 = arith.constant 9.99999997E-7 : f32
    %113 = vector.broadcast %cst_52 : f32 to vector<16x256xf32>
    %114 = arith.addf %112, %113 : vector<16x256xf32>
    %115 = arith.mulf %88, %106 : vector<16x256xf32>
    %116 = tpu.reciprocal %114 {approx = true} : vector<16x256xf32> -> vector<16x256xf32>
    %117 = arith.mulf %115, %116 : vector<16x256xf32>
    %118 = arith.truncf %117 : vector<16x256xf32> to vector<16x256xbf16>
    %c32_53 = arith.constant 32 : index
    %c0_54 = arith.constant 0 : index
    %119 = vector.load %arg4[%c32_53, %c0_54] : memref<48x256xbf16, #tpu.memory_space<vmem>>, vector<16x256xbf16>
    tpu.vector_store %arg4[%c32_53, %c0_54], %118 {strides = array<i32>} : memref<48x256xbf16, #tpu.memory_space<vmem>>, vector<16x256xbf16>,
    %c0_55 = arith.constant 0 : index
    %c0_56 = arith.constant 0 : index
    %120 = vector.load %arg4[%c0_55, %c0_56] : memref<48x256xbf16, #tpu.memory_space<vmem>>, vector<48x256xbf16>
    %121 = arith.truncf %117 : vector<16x256xf32> to vector<16x256xbf16>
    "tpu.trace_start"() <{level = 10 : i32, message = "rn,mn->rm"}> : () -> ()
    %cst_57 = arith.constant dense<0.000000e+00> : vector<16x48xf32>
    %122 = tpu.matmul %121, %120, %cst_57 {dimension_numbers = #tpu.dot_dimension_numbers<[1], [1], [0], [0], [0, 0, 1, 0], [], []>} : vector<16x256xbf16>, vector<48x256xbf16>, vector<16x48xf32> -> vector<16x48xf32>
    "tpu.trace_stop"() : () -> ()
    %123 = vector.extract_strided_slice %122 {offsets = [0, 0], sizes = [16, 32], strides = [1, 1]} : vector<16x48xf32> to vector<16x32xf32>
    %124 = vector.extract_strided_slice %122 {offsets = [0, 32], sizes = [16, 16], strides = [1, 1]} : vector<16x48xf32> to vector<16x16xf32>
    %125 = arith.truncf %124 : vector<16x16xf32> to vector<16x16xbf16>
    %126 = arith.truncf %103 : vector<16x32xf32> to vector<16x32xbf16>
    "tpu.trace_start"() <{level = 10 : i32, message = "rs,sd->rd"}> : () -> ()
    %cst_58 = arith.constant dense<0.000000e+00> : vector<16x32xf32>
    %127 = tpu.matmul %125, %126, %cst_58 {dimension_numbers = #tpu.dot_dimension_numbers<[1], [0], [0], [1], [0, 0, 1, 1], [], []>} : vector<16x16xbf16>, vector<16x32xbf16>, vector<16x32xf32> -> vector<16x32xf32>
    "tpu.trace_stop"() : () -> ()
    %cst_59 = arith.constant 9.99999997E-7 : f32
    %128 = vector.broadcast %cst_59 : f32 to vector<16x32xf32>
    %129 = arith.addf %127, %128 : vector<16x32xf32>
    %130 = arith.mulf %103, %123 : vector<16x32xf32>
    %131 = tpu.reciprocal %129 {approx = true} : vector<16x32xf32> -> vector<16x32xf32>
    %132 = arith.mulf %130, %131 : vector<16x32xf32>
    %c3_i32 = arith.constant 3 : i32
    %c0_60 = arith.constant 0 : index
    %c0_61 = arith.constant 0 : index
    %133 = vector.load %arg4[%c0_60, %c0_61] : memref<48x256xbf16, #tpu.memory_space<vmem>>, vector<32x256xbf16>
    %134 = arith.truncf %132 : vector<16x32xf32> to vector<16x32xbf16>
    "tpu.trace_start"() <{level = 10 : i32, message = "rd,dn->rn"}> : () -> ()
    %cst_62 = arith.constant dense<0.000000e+00> : vector<16x256xf32>
    %135 = tpu.matmul %134, %133, %cst_62 {dimension_numbers = #tpu.dot_dimension_numbers<[1], [0], [0], [1], [0, 0, 1, 1], [], []>} : vector<16x32xbf16>, vector<32x256xbf16>, vector<16x256xf32> -> vector<16x256xf32>
    "tpu.trace_stop"() : () -> ()
    %136 = arith.truncf %132 : vector<16x32xf32> to vector<16x32xbf16>
    %137 = arith.truncf %132 : vector<16x32xf32> to vector<16x32xbf16>
    "tpu.trace_start"() <{level = 10 : i32, message = "rd,sd->rs"}> : () -> ()
    %cst_63 = arith.constant dense<0.000000e+00> : vector<16x16xf32>
    %138 = tpu.matmul %136, %137, %cst_63 {dimension_numbers = #tpu.dot_dimension_numbers<[1], [1], [0], [0], [0, 0, 1, 0], [], []>} : vector<16x32xbf16>, vector<16x32xbf16>, vector<16x16xf32> -> vector<16x16xf32>
    "tpu.trace_stop"() : () -> ()
    %139 = arith.truncf %138 : vector<16x16xf32> to vector<16x16xbf16>
    %140 = arith.truncf %117 : vector<16x256xf32> to vector<16x256xbf16>
    "tpu.trace_start"() <{level = 10 : i32, message = "rs,sn->rn"}> : () -> ()
    %cst_64 = arith.constant dense<0.000000e+00> : vector<16x256xf32>
    %141 = tpu.matmul %139, %140, %cst_64 {dimension_numbers = #tpu.dot_dimension_numbers<[1], [0], [0], [1], [0, 0, 1, 1], [], []>} : vector<16x16xbf16>, vector<16x256xbf16>, vector<16x256xf32> -> vector<16x256xf32>
    "tpu.trace_stop"() : () -> ()
    %cst_65 = arith.constant 9.99999997E-7 : f32
    %142 = vector.broadcast %cst_65 : f32 to vector<16x256xf32>
    %143 = arith.addf %141, %142 : vector<16x256xf32>
    %144 = arith.mulf %117, %135 : vector<16x256xf32>
    %145 = tpu.reciprocal %143 {approx = true} : vector<16x256xf32> -> vector<16x256xf32>
    %146 = arith.mulf %144, %145 : vector<16x256xf32>
    %147 = arith.truncf %146 : vector<16x256xf32> to vector<16x256xbf16>
    %c32_66 = arith.constant 32 : index
    %c0_67 = arith.constant 0 : index
    %148 = vector.load %arg4[%c32_66, %c0_67] : memref<48x256xbf16, #tpu.memory_space<vmem>>, vector<16x256xbf16>
    tpu.vector_store %arg4[%c32_66, %c0_67], %147 {strides = array<i32>} : memref<48x256xbf16, #tpu.memory_space<vmem>>, vector<16x256xbf16>,
    %c0_68 = arith.constant 0 : index
    %c0_69 = arith.constant 0 : index
    %149 = vector.load %arg4[%c0_68, %c0_69] : memref<48x256xbf16, #tpu.memory_space<vmem>>, vector<48x256xbf16>
    %150 = arith.truncf %146 : vector<16x256xf32> to vector<16x256xbf16>
    "tpu.trace_start"() <{level = 10 : i32, message = "rn,mn->rm"}> : () -> ()
    %cst_70 = arith.constant dense<0.000000e+00> : vector<16x48xf32>
    %151 = tpu.matmul %150, %149, %cst_70 {dimension_numbers = #tpu.dot_dimension_numbers<[1], [1], [0], [0], [0, 0, 1, 0], [], []>} : vector<16x256xbf16>, vector<48x256xbf16>, vector<16x48xf32> -> vector<16x48xf32>
    "tpu.trace_stop"() : () -> ()
    %152 = vector.extract_strided_slice %151 {offsets = [0, 0], sizes = [16, 32], strides = [1, 1]} : vector<16x48xf32> to vector<16x32xf32>
    %153 = vector.extract_strided_slice %151 {offsets = [0, 32], sizes = [16, 16], strides = [1, 1]} : vector<16x48xf32> to vector<16x16xf32>
    %154 = arith.truncf %153 : vector<16x16xf32> to vector<16x16xbf16>
    %155 = arith.truncf %132 : vector<16x32xf32> to vector<16x32xbf16>
    "tpu.trace_start"() <{level = 10 : i32, message = "rs,sd->rd"}> : () -> ()
    %cst_71 = arith.constant dense<0.000000e+00> : vector<16x32xf32>
    %156 = tpu.matmul %154, %155, %cst_71 {dimension_numbers = #tpu.dot_dimension_numbers<[1], [0], [0], [1], [0, 0, 1, 1], [], []>} : vector<16x16xbf16>, vector<16x32xbf16>, vector<16x32xf32> -> vector<16x32xf32>
    "tpu.trace_stop"() : () -> ()
    %cst_72 = arith.constant 9.99999997E-7 : f32
    %157 = vector.broadcast %cst_72 : f32 to vector<16x32xf32>
    %158 = arith.addf %156, %157 : vector<16x32xf32>
    %159 = arith.mulf %132, %152 : vector<16x32xf32>
    %160 = tpu.reciprocal %158 {approx = true} : vector<16x32xf32> -> vector<16x32xf32>
    %161 = arith.mulf %159, %160 : vector<16x32xf32>
    %c4_i32 = arith.constant 4 : i32
    %c0_73 = arith.constant 0 : index
    %c0_74 = arith.constant 0 : index
    %162 = vector.load %arg4[%c0_73, %c0_74] : memref<48x256xbf16, #tpu.memory_space<vmem>>, vector<32x256xbf16>
    %163 = arith.truncf %161 : vector<16x32xf32> to vector<16x32xbf16>
    "tpu.trace_start"() <{level = 10 : i32, message = "rd,dn->rn"}> : () -> ()
    %cst_75 = arith.constant dense<0.000000e+00> : vector<16x256xf32>
    %164 = tpu.matmul %163, %162, %cst_75 {dimension_numbers = #tpu.dot_dimension_numbers<[1], [0], [0], [1], [0, 0, 1, 1], [], []>} : vector<16x32xbf16>, vector<32x256xbf16>, vector<16x256xf32> -> vector<16x256xf32>
    "tpu.trace_stop"() : () -> ()
    %165 = arith.truncf %161 : vector<16x32xf32> to vector<16x32xbf16>
    %166 = arith.truncf %161 : vector<16x32xf32> to vector<16x32xbf16>
    "tpu.trace_start"() <{level = 10 : i32, message = "rd,sd->rs"}> : () -> ()
    %cst_76 = arith.constant dense<0.000000e+00> : vector<16x16xf32>
    %167 = tpu.matmul %165, %166, %cst_76 {dimension_numbers = #tpu.dot_dimension_numbers<[1], [1], [0], [0], [0, 0, 1, 0], [], []>} : vector<16x32xbf16>, vector<16x32xbf16>, vector<16x16xf32> -> vector<16x16xf32>
    "tpu.trace_stop"() : () -> ()
    %168 = arith.truncf %167 : vector<16x16xf32> to vector<16x16xbf16>
    %169 = arith.truncf %146 : vector<16x256xf32> to vector<16x256xbf16>
    "tpu.trace_start"() <{level = 10 : i32, message = "rs,sn->rn"}> : () -> ()
    %cst_77 = arith.constant dense<0.000000e+00> : vector<16x256xf32>
    %170 = tpu.matmul %168, %169, %cst_77 {dimension_numbers = #tpu.dot_dimension_numbers<[1], [0], [0], [1], [0, 0, 1, 1], [], []>} : vector<16x16xbf16>, vector<16x256xbf16>, vector<16x256xf32> -> vector<16x256xf32>
    "tpu.trace_stop"() : () -> ()
    %cst_78 = arith.constant 9.99999997E-7 : f32
    %171 = vector.broadcast %cst_78 : f32 to vector<16x256xf32>
    %172 = arith.addf %170, %171 : vector<16x256xf32>
    %173 = arith.mulf %146, %164 : vector<16x256xf32>
    %174 = tpu.reciprocal %172 {approx = true} : vector<16x256xf32> -> vector<16x256xf32>
    %175 = arith.mulf %173, %174 : vector<16x256xf32>
    %176 = arith.truncf %175 : vector<16x256xf32> to vector<16x256xbf16>
    %c32_79 = arith.constant 32 : index
    %c0_80 = arith.constant 0 : index
    %177 = vector.load %arg4[%c32_79, %c0_80] : memref<48x256xbf16, #tpu.memory_space<vmem>>, vector<16x256xbf16>
    tpu.vector_store %arg4[%c32_79, %c0_80], %176 {strides = array<i32>} : memref<48x256xbf16, #tpu.memory_space<vmem>>, vector<16x256xbf16>,
    %c0_81 = arith.constant 0 : index
    %c0_82 = arith.constant 0 : index
    %178 = vector.load %arg4[%c0_81, %c0_82] : memref<48x256xbf16, #tpu.memory_space<vmem>>, vector<48x256xbf16>
    %179 = arith.truncf %175 : vector<16x256xf32> to vector<16x256xbf16>
    "tpu.trace_start"() <{level = 10 : i32, message = "rn,mn->rm"}> : () -> ()
    %cst_83 = arith.constant dense<0.000000e+00> : vector<16x48xf32>
    %180 = tpu.matmul %179, %178, %cst_83 {dimension_numbers = #tpu.dot_dimension_numbers<[1], [1], [0], [0], [0, 0, 1, 0], [], []>} : vector<16x256xbf16>, vector<48x256xbf16>, vector<16x48xf32> -> vector<16x48xf32>
    "tpu.trace_stop"() : () -> ()
    %181 = vector.extract_strided_slice %180 {offsets = [0, 0], sizes = [16, 32], strides = [1, 1]} : vector<16x48xf32> to vector<16x32xf32>
    %182 = vector.extract_strided_slice %180 {offsets = [0, 32], sizes = [16, 16], strides = [1, 1]} : vector<16x48xf32> to vector<16x16xf32>
    %183 = arith.truncf %182 : vector<16x16xf32> to vector<16x16xbf16>
    %184 = arith.truncf %161 : vector<16x32xf32> to vector<16x32xbf16>
    "tpu.trace_start"() <{level = 10 : i32, message = "rs,sd->rd"}> : () -> ()
    %cst_84 = arith.constant dense<0.000000e+00> : vector<16x32xf32>
    %185 = tpu.matmul %183, %184, %cst_84 {dimension_numbers = #tpu.dot_dimension_numbers<[1], [0], [0], [1], [0, 0, 1, 1], [], []>} : vector<16x16xbf16>, vector<16x32xbf16>, vector<16x32xf32> -> vector<16x32xf32>
    "tpu.trace_stop"() : () -> ()
    %cst_85 = arith.constant 9.99999997E-7 : f32
    %186 = vector.broadcast %cst_85 : f32 to vector<16x32xf32>
    %187 = arith.addf %185, %186 : vector<16x32xf32>
    %188 = arith.mulf %161, %181 : vector<16x32xf32>
    %189 = tpu.reciprocal %187 {approx = true} : vector<16x32xf32> -> vector<16x32xf32>
    %190 = arith.mulf %188, %189 : vector<16x32xf32>
    %c5_i32 = arith.constant 5 : i32
    %c0_86 = arith.constant 0 : index
    %c0_87 = arith.constant 0 : index
    %191 = vector.load %arg4[%c0_86, %c0_87] : memref<48x256xbf16, #tpu.memory_space<vmem>>, vector<32x256xbf16>
    %192 = arith.truncf %190 : vector<16x32xf32> to vector<16x32xbf16>
    "tpu.trace_start"() <{level = 10 : i32, message = "rd,dn->rn"}> : () -> ()
    %cst_88 = arith.constant dense<0.000000e+00> : vector<16x256xf32>
    %193 = tpu.matmul %192, %191, %cst_88 {dimension_numbers = #tpu.dot_dimension_numbers<[1], [0], [0], [1], [0, 0, 1, 1], [], []>} : vector<16x32xbf16>, vector<32x256xbf16>, vector<16x256xf32> -> vector<16x256xf32>
    "tpu.trace_stop"() : () -> ()
    %194 = arith.truncf %190 : vector<16x32xf32> to vector<16x32xbf16>
    %195 = arith.truncf %190 : vector<16x32xf32> to vector<16x32xbf16>
    "tpu.trace_start"() <{level = 10 : i32, message = "rd,sd->rs"}> : () -> ()
    %cst_89 = arith.constant dense<0.000000e+00> : vector<16x16xf32>
    %196 = tpu.matmul %194, %195, %cst_89 {dimension_numbers = #tpu.dot_dimension_numbers<[1], [1], [0], [0], [0, 0, 1, 0], [], []>} : vector<16x32xbf16>, vector<16x32xbf16>, vector<16x16xf32> -> vector<16x16xf32>
    "tpu.trace_stop"() : () -> ()
    %197 = arith.truncf %196 : vector<16x16xf32> to vector<16x16xbf16>
    %198 = arith.truncf %175 : vector<16x256xf32> to vector<16x256xbf16>
    "tpu.trace_start"() <{level = 10 : i32, message = "rs,sn->rn"}> : () -> ()
    %cst_90 = arith.constant dense<0.000000e+00> : vector<16x256xf32>
    %199 = tpu.matmul %197, %198, %cst_90 {dimension_numbers = #tpu.dot_dimension_numbers<[1], [0], [0], [1], [0, 0, 1, 1], [], []>} : vector<16x16xbf16>, vector<16x256xbf16>, vector<16x256xf32> -> vector<16x256xf32>
    "tpu.trace_stop"() : () -> ()
    %cst_91 = arith.constant 9.99999997E-7 : f32
    %200 = vector.broadcast %cst_91 : f32 to vector<16x256xf32>
    %201 = arith.addf %199, %200 : vector<16x256xf32>
    %202 = arith.mulf %175, %193 : vector<16x256xf32>
    %203 = tpu.reciprocal %201 {approx = true} : vector<16x256xf32> -> vector<16x256xf32>
    %204 = arith.mulf %202, %203 : vector<16x256xf32>
    %205 = arith.truncf %204 : vector<16x256xf32> to vector<16x256xbf16>
    %c32_92 = arith.constant 32 : index
    %c0_93 = arith.constant 0 : index
    %206 = vector.load %arg4[%c32_92, %c0_93] : memref<48x256xbf16, #tpu.memory_space<vmem>>, vector<16x256xbf16>
    tpu.vector_store %arg4[%c32_92, %c0_93], %205 {strides = array<i32>} : memref<48x256xbf16, #tpu.memory_space<vmem>>, vector<16x256xbf16>,
    %c0_94 = arith.constant 0 : index
    %c0_95 = arith.constant 0 : index
    %207 = vector.load %arg4[%c0_94, %c0_95] : memref<48x256xbf16, #tpu.memory_space<vmem>>, vector<48x256xbf16>
    %208 = arith.truncf %204 : vector<16x256xf32> to vector<16x256xbf16>
    "tpu.trace_start"() <{level = 10 : i32, message = "rn,mn->rm"}> : () -> ()
    %cst_96 = arith.constant dense<0.000000e+00> : vector<16x48xf32>
    %209 = tpu.matmul %208, %207, %cst_96 {dimension_numbers = #tpu.dot_dimension_numbers<[1], [1], [0], [0], [0, 0, 1, 0], [], []>} : vector<16x256xbf16>, vector<48x256xbf16>, vector<16x48xf32> -> vector<16x48xf32>
    "tpu.trace_stop"() : () -> ()
    %210 = vector.extract_strided_slice %209 {offsets = [0, 0], sizes = [16, 32], strides = [1, 1]} : vector<16x48xf32> to vector<16x32xf32>
    %211 = vector.extract_strided_slice %209 {offsets = [0, 32], sizes = [16, 16], strides = [1, 1]} : vector<16x48xf32> to vector<16x16xf32>
    %212 = arith.truncf %211 : vector<16x16xf32> to vector<16x16xbf16>
    %213 = arith.truncf %190 : vector<16x32xf32> to vector<16x32xbf16>
    "tpu.trace_start"() <{level = 10 : i32, message = "rs,sd->rd"}> : () -> ()
    %cst_97 = arith.constant dense<0.000000e+00> : vector<16x32xf32>
    %214 = tpu.matmul %212, %213, %cst_97 {dimension_numbers = #tpu.dot_dimension_numbers<[1], [0], [0], [1], [0, 0, 1, 1], [], []>} : vector<16x16xbf16>, vector<16x32xbf16>, vector<16x32xf32> -> vector<16x32xf32>
    "tpu.trace_stop"() : () -> ()
    %cst_98 = arith.constant 9.99999997E-7 : f32
    %215 = vector.broadcast %cst_98 : f32 to vector<16x32xf32>
    %216 = arith.addf %214, %215 : vector<16x32xf32>
    %217 = arith.mulf %190, %210 : vector<16x32xf32>
    %218 = tpu.reciprocal %216 {approx = true} : vector<16x32xf32> -> vector<16x32xf32>
    %219 = arith.mulf %217, %218 : vector<16x32xf32>
    %c0_99 = arith.constant 0 : index
    %c0_100 = arith.constant 0 : index
    %220 = vector.load %arg4[%c0_99, %c0_100] : memref<48x256xbf16, #tpu.memory_space<vmem>>, vector<32x256xbf16>
    %221 = arith.truncf %219 : vector<16x32xf32> to vector<16x32xbf16>
    "tpu.trace_start"() <{level = 10 : i32, message = "rd,dn->rn"}> : () -> ()
    %cst_101 = arith.constant dense<0.000000e+00> : vector<16x256xf32>
    %222 = tpu.matmul %221, %220, %cst_101 {dimension_numbers = #tpu.dot_dimension_numbers<[1], [0], [0], [1], [0, 0, 1, 1], [], []>} : vector<16x32xbf16>, vector<32x256xbf16>, vector<16x256xf32> -> vector<16x256xf32>
    "tpu.trace_stop"() : () -> ()
    %223 = arith.truncf %219 : vector<16x32xf32> to vector<16x32xbf16>
    %224 = arith.truncf %219 : vector<16x32xf32> to vector<16x32xbf16>
    "tpu.trace_start"() <{level = 10 : i32, message = "rd,sd->rs"}> : () -> ()
    %cst_102 = arith.constant dense<0.000000e+00> : vector<16x16xf32>
    %225 = tpu.matmul %223, %224, %cst_102 {dimension_numbers = #tpu.dot_dimension_numbers<[1], [1], [0], [0], [0, 0, 1, 0], [], []>} : vector<16x32xbf16>, vector<16x32xbf16>, vector<16x16xf32> -> vector<16x16xf32>
    "tpu.trace_stop"() : () -> ()
    %226 = arith.truncf %225 : vector<16x16xf32> to vector<16x16xbf16>
    %227 = arith.truncf %204 : vector<16x256xf32> to vector<16x256xbf16>
    "tpu.trace_start"() <{level = 10 : i32, message = "rs,sn->rn"}> : () -> ()
    %cst_103 = arith.constant dense<0.000000e+00> : vector<16x256xf32>
    %228 = tpu.matmul %226, %227, %cst_103 {dimension_numbers = #tpu.dot_dimension_numbers<[1], [0], [0], [1], [0, 0, 1, 1], [], []>} : vector<16x16xbf16>, vector<16x256xbf16>, vector<16x256xf32> -> vector<16x256xf32>
    "tpu.trace_stop"() : () -> ()
    %cst_104 = arith.constant 9.99999997E-7 : f32
    %229 = vector.broadcast %cst_104 : f32 to vector<16x256xf32>
    %230 = arith.addf %228, %229 : vector<16x256xf32>
    %231 = arith.mulf %204, %222 : vector<16x256xf32>
    %232 = arith.divf %231, %230 : vector<16x256xf32>
    %233 = arith.truncf %219 : vector<16x32xf32> to vector<16x32xbf16>
    %234 = arith.truncf %232 : vector<16x256xf32> to vector<16x256xbf16>
    "tpu.trace_start"() <{level = 10 : i32, message = "rd,rn->dn"}> : () -> ()
    %cst_105 = arith.constant dense<0.000000e+00> : vector<32x256xf32>
    %235 = tpu.matmul %233, %234, %cst_105 {dimension_numbers = #tpu.dot_dimension_numbers<[0], [0], [1], [1], [0, 1, 1, 1], [], []>} : vector<16x32xbf16>, vector<16x256xbf16>, vector<32x256xf32> -> vector<32x256xf32>
    "tpu.trace_stop"() : () -> ()
    %c0_106 = arith.constant 0 : index
    %c0_107 = arith.constant 0 : index
    %c0_108 = arith.constant 0 : index
    %236 = vector.load %arg3[%c0_106, %c0_107, %c0_108] : memref<1x32x256xf32, #tpu.memory_space<vmem>>, vector<1x32x256xf32>
    %237 = vector.shape_cast %236 : vector<1x32x256xf32> to vector<32x256xf32>
    %238 = vector.shape_cast %235 : vector<32x256xf32> to vector<1x32x256xf32>
    tpu.vector_store %arg3[%c0_106, %c0_107, %c0_108], %238 {strides = array<i32>} : memref<1x32x256xf32, #tpu.memory_space<vmem>>, vector<1x32x256xf32>,
    return
  }
  func.func @transform_0(%arg0: i32) -> (i32, i32, i32) {
    %c0_i32 = arith.constant 0 : i32
    %c0_i32_0 = arith.constant 0 : i32
    %c0_i32_1 = arith.constant 0 : i32
    return %arg0, %c0_i32, %c0_i32_0 : i32, i32, i32
  }
  func.func @transform_1(%arg0: i32) -> (i32, i32, i32) {
    %c0_i32 = arith.constant 0 : i32
    %c0_i32_0 = arith.constant 0 : i32
    %c0_i32_1 = arith.constant 0 : i32
    return %arg0, %c0_i32, %c0_i32_0 : i32, i32, i32
  }
  func.func @transform_2(%arg0: i32) -> (i32, i32, i32) {
    %c0_i32 = arith.constant 0 : i32
    %c0_i32_0 = arith.constant 0 : i32
    %c0_i32_1 = arith.constant 0 : i32
    return %arg0, %c0_i32, %c0_i32_0 : i32, i32, i32
  }
}

</mosaic_0001>

<bundles_post_ra>
// kernel: tpu_custom_call.1
= control target key start
LH: loop header
LB: loop body
LE: loop exit
PB: predicated region body
PF: predicated region fallthrough
CT: control target
= control target key end

     0   :  { %7 = vsyncpa [#allocation4], 0  ;;  %s3496_s0 = inlined_call_operand.hbm [shape: f32[2,32,256], index: 0, kind: input, shape index: {}]   ;;  %s3497_s1 = inlined_call_operand.hbm [shape: f32[2,16,32], index: 1, kind: input, shape index: {}]   ;;  %s3498_s2 = inlined_call_operand.hbm [shape: f32[2,32,256], index: 2, kind: output, shape index: {}]  }
   0x1   :  { %9 = vsyncpa [#allocation4 + $0x1], 0 }
   0x2   :  { %10 = vsyncpa [#allocation7], 0 }
   0x3   :  { %12 = vsyncpa [#allocation7 + $0x1], 0 }
   0x4   :  { %13 = vsyncpa [#allocation5], 0 }
   0x5   :  { %15 = vsyncpa [#allocation5 + $0x1], 0  ;;  %s2912_s9 = smov 0   ;;  %s2914_s10 = smov 0  }
   0x6   :  { %s2916_s11 = smov 0   ;;  %s2918_s12 = smov 0  }
   0x7 LB: > { %s2933_s13 = sadd.s32 4294967295, %s2882_s12   ;;  %s2413_s14 = sadd.s32 4294967294, %s2882_s12   ;;  %s2882_s12 = sphi %s2918_s12, %s3514_s12   ;;  %s2878_s11 = sphi %s2916_s11, %s3513_s11   ;;  %s2874_s10 = sphi %s2914_s10, %s3512_s10   ;;  %s2870_s9 = sphi %s2912_s9, %s3511_s9  }
   0x8   : > { %s2937_s15 = sadd.s32 1, %s2882_s12   ;;  %s28_s16 = sadd.s32 1, %s2878_s11 }
   0x9   : > { %s25_s17 = ssub.s32 %s2882_s12, %s2937_s15  ;;  %p35_p0 = scmp.ne.s32.totalorder %s2878_s11, %s2874_s10 }
   0xa   : > { %p26_p1 = scmp.eq.s32.totalorder %s25_s17, 0  ;;  %p36_p2 = scmp.eq.s32.totalorder %s2882_s12, 0 }
   0xb   : > { %p41_p3 = scmp.ne.s32.totalorder %s2874_s10, %s2870_s9  ;;  %p42_p4 = scmp.eq.s32.totalorder %s2933_s13, 0 }
   0xc   : > { %s2949_s18 = scalar_select %p26_p1, %s2878_s11, %s28_s16  }
   0xd   : > { %p2951_p5 = por %p36_p2, %p35_p0  ;;  %p2955_p6 = por %p42_p4, %p41_p3 }
   0xe   : > { %p91_p7 = scmp.eq.s32.totalorder %s2933_s13, 1  ;;  %p97_p8 = scmp.eq.s32.totalorder %s2413_s14, 1 }
   0xf   : > { %s3502_s20 = scalar_select %p2955_p6, 1, 0 }
  0x10   : > { %p2604_p10 = scmp.lt.s32.totalorder %s2882_s12, 2  ;;  %p2962_p11 = por %p91_p7, %p35_p0 }
  0x11   : > { %p2966_p12 = por %p97_p8, %p41_p3  ;;  %s2971_s23 = sand.u32 1, %s2878_s11  }
  0x12   : > { %s3503_s21 = scalar_select %p2962_p11, 1, 0 }
  0x13   : > { %s3504_s22 = scalar_select %p2966_p12, 1, 0 }
  0x14   : > { %s2464_s24 = sshll.u32 %s2882_s12, 10  ;;  %s2416_s25 = sshll.u32 %s2971_s23, 6 }
  0x15   : > { %s2978_s28 = scalar_lea.hbm %s3496_s0, %s2464_s24  ;;  %s121_s29 = scalar_lea.vmem [#allocation3], %s2416_s25 }
  0x16   : > { %s128_s30 = sshll.u32 %s121_s29, 4  ;;  %p2982_p13 = pnand %p2604_p10, %p2951_p5  ;;  %s2986_s30 = int_to_ptr.vmem [resolvable:$true] %s128_s30 }
  0x17   : > { %s118_s4 = scalar_lea.sflag [#allocation4], %s2971_s23  ;;  %s2752_s5 = scalar_lea.hbm %s2978_s28, 1024 }
  0x18   : > { %p2753_p0 = scmp.ne.s32.totalorder %s2978_s28, %s2752_s5  ;;  %p2754_p1 = pneg %p2982_p13 }
  0x19   : > { %s2757_s8 = scalar_lea.hbm %s3496_s0, 2048  ;;  %p2758_p4 = scmp.lt.u32.totalorder %s2978_s28, %s3496_s0 }
  0x1a   : > { %p2755_p2 = pnand %p2754_p1, %p2753_p0  ;;  %p2759_p5 = scmp.lt.u32.totalorder %s2757_s8, %s2752_s5 }
  0x1b   : > { %p2761_p8 = scmp.lt.u32.totalorder %s2752_s5, %s2978_s28 }
  0x1c   : > { %p2756_p3 = pneg %p2755_p2  ;;  %p2760_p7 = por %p2759_p5, %p2758_p4 }
  0x1e   : > { %p2762_p10 = por %p2761_p8, %p2760_p7 }
  0x20   : > { %p2763_p9 = pnand %p2762_p10, %p2756_p3 }
  0x22   : > { %2766 = shalt.err (!%p2763_p9)
}
  0x23   : > { %s2767_s17 = scalar_lea.vmem %s2986_s30, 1024  ;;  %s2884_s19 = smov [#allocation3]  }
  0x24   : > { %p2768_p0 = scmp.ne.s32.totalorder %s2986_s30, %s2767_s17  ;;  %s2772_s24 = sshll.u32 %s2884_s19, 4  ;;  %s2773_s24 = int_to_ptr.vmem [resolvable:$false] %s2772_s24 }
  0x25   : > { %s2774_s25 = scalar_lea.vmem %s2773_s24, 2048  ;;  %p2775_p11 = scmp.lt.s32.totalorder %s2986_s30, %s2773_s24 }
  0x26   : > { %p2770_p2 = pnand %p2768_p0, %p2754_p1  ;;  %p2776_p4 = scmp.lt.s32.totalorder %s2774_s25, %s2767_s17 }
  0x28   : > { %p2771_p12 = pneg %p2770_p2  ;;  %p2777_p5 = por %p2776_p4, %p2775_p11 }
  0x2a   : > { %p2778_p7 = pnand %p2777_p5, %p2771_p12 }
  0x2c   : > { %2781 = shalt.err (!%p2778_p7)
}
  0x2d   : > { %s2885_s26 = smov 256   ;;  %s2886_s27 = smov 16  }
  0x2e   : > { %2596 = dma.hbm_to_vmem [thread:$0]  (!%p2982_p13), %s2978_s28, 1024, %s2986_s30, %s118_s4, %s2885_s26, %s2885_s26, %s2886_s27  }
  0x2f   : > { %p2422_p9 = scmp.ge.s32.totalorder %s2882_s12, 1  ;;  %p157_p3 = scmp.lt.s32.totalorder %s2882_s12, 3 }
  0x30   : > { %s2419_s29 = sshll.u32 %s2971_s23, 4  ;;  %s2465_s6 = sshll.u32 %s2882_s12, 8 }
  0x31   : > { %p3019_p11 = pnand %p2422_p9, %p157_p3  ;;  %s142_s7 = scalar_lea.vmem [#allocation6], %s2419_s29 }
  0x32   : > { %s149_s8 = sshll.u32 %s142_s7, 4  ;;  %s3027_s17 = scalar_lea.hbm %s3497_s1, %s2465_s6  ;;  %s3029_s8 = int_to_ptr.vmem [resolvable:$true] %s149_s8 }
  0x33   : > { %s139_s28 = scalar_lea.sflag [#allocation7], %s2971_s23  ;;  %s2782_s30 = scalar_lea.hbm %s3027_s17, 256 }
  0x34   : > { %p2783_p12 = scmp.ne.s32.totalorder %s3027_s17, %s2782_s30  ;;  %s2787_s24 = scalar_lea.hbm %s3497_s1, 512 }
  0x35   : > { %p2788_p0 = scmp.lt.u32.totalorder %s3027_s17, %s3497_s1  ;;  %p2789_p2 = scmp.lt.u32.totalorder %s2787_s24, %s2782_s30 }
  0x36   : > { %p2785_p8 = pnand %p2783_p12, %p2754_p1  ;;  %p2791_p5 = scmp.lt.u32.totalorder %s2782_s30, %s3027_s17 }
  0x37   : > { %p2790_p4 = por %p2789_p2, %p2788_p0 }
  0x38   : > { %p2786_p10 = pneg %p2785_p8 }
  0x39   : > { %p2792_p7 = por %p2791_p5, %p2790_p4 }
  0x3b   : > { %p2793_p9 = pnand %p2792_p7, %p2786_p10 }
  0x3d   : > { %2796 = shalt.err (!%p2793_p9)
}
  0x3e   : > { %s2797_s27 = scalar_lea.vmem %s3029_s8, 256  ;;  %s2887_s29 = smov [#allocation6]  }
  0x3f   : > { %p2798_p3 = scmp.ne.s32.totalorder %s3029_s8, %s2797_s27  ;;  %s2802_s6 = sshll.u32 %s2887_s29, 4  ;;  %s2803_s6 = int_to_ptr.vmem [resolvable:$false] %s2802_s6 }
  0x40   : > { %s2804_s7 = scalar_lea.vmem %s2803_s6, 512  ;;  %p2805_p6 = scmp.lt.s32.totalorder %s3029_s8, %s2803_s6 }
  0x41   : > { %p2800_p12 = pnand %p2798_p3, %p2754_p1  ;;  %p2806_p0 = scmp.lt.s32.totalorder %s2804_s7, %s2797_s27 }
  0x43   : > { %p2801_p8 = pneg %p2800_p12  ;;  %p2807_p2 = por %p2806_p0, %p2805_p6 }
  0x45   : > { %p2808_p4 = pnand %p2807_p2, %p2801_p8 }
  0x47   : > { %2811 = shalt.err (!%p2808_p4)
}
  0x48   : > { %s2888_s14 = smov 128   ;;  %s2889_s16 = smov 8  }
  0x49   : > { %2599 = dma.hbm_to_vmem [thread:$0]  (!%p2982_p13), %s3027_s17, 256, %s3029_s8, %s139_s28, %s2888_s14, %s2888_s14, %s2889_s16  }
  0x4a   : > { %161 = sbr.rel (%p3019_p11) target bundleno = 8033 (0x1f61), region = 28  ;;  %s3060_s30 = sand.u32 (!%p3019_p11), 1, %s2874_s10  }
  0x4b   : > { %s2423_s4 = sshll.u32 (!%p3019_p11), %s3060_s30, 6  ;;  %s164_s19 = scalar_lea.sflag (!%p3019_p11), [#allocation4], %s3060_s30 }
  0x4c   : > { %s167_s24 = scalar_lea.vmem (!%p3019_p11), [#allocation3], %s2423_s4  ;;  %p3507_p6 = scmp.ne.s32.totalorder (!%p3019_p11), %s3502_s20, 0 }
  0x51   : > { %2857 = dma.done.wait (%p3507_p6), %s164_s19, 1024  }
  0x52   : > { %2859 = vsyncadd (%p3507_p6), %s164_s19, 4294966272  ;;  %s2424_s23 = sshll.u32 %s3060_s30, 4  ;;  %s173_s3 = scalar_lea.sflag [#allocation7], %s3060_s30 }
  0x53   : > { %s176_s5 = scalar_lea.vmem [#allocation6], %s2424_s23 }
  0x54   : > { %2861 = dma.done.wait (%p3507_p6), %s173_s3, 256  }
  0x55   : > { %2863 = vsyncadd (%p3507_p6), %s173_s3, 4294967040  ;;  %v2890_v0 = vmov 0   ;;  %v204_v1 = vld [vmem:[%s167_s24 + $0x8] sm:$0xff]  ;;  %v206_v2 = vld [vmem:[%s167_s24 + $0x18] sm:$0xff]  ;;  %vm226_vm0 = vcmask 261120   ;;  %v2891_v16 = vmov 0.0  }
  0x56   : > { %262 = vmatprep.mubr.bf16.mxu1 %v2890_v0  ;;  %403 = vmatprep.mubr.bf16.mxu0 %v2890_v0  ;;  %v203_v3 = vld [vmem:[%s167_s24] sm:$0xff]  ;;  %v3078_v4 = vpack.c.bf16 %v206_v2, %v204_v1  ;;  %v205_v5 = vld [vmem:[%s167_s24 + $0x10] sm:$0xff]  ;;  %v208_v6 = vld [vmem:[%s167_s24 + $0x28] sm:$0xff]  ;;  %vm2892_vm1 = vmmov 0   ;;  %vm367_vm2 = vcmask 130048   ;;  %s2893_s20 = smov 96  }
  0x57   : > { %v210_v7 = vld [vmem:[%s167_s24 + $0x38] sm:$0xff]  ;;  %v3080_v8 = vpack.c.bf16 %v205_v5, %v203_v3  ;;  %v207_v10 = vld [vmem:[%s167_s24 + $0x20] sm:$0xff]  ;;  %v209_v11 = vld [vmem:[%s167_s24 + $0x30] sm:$0xff]  ;;  %s201_s8 = scalar_lea.vmem [#allocation8], %s2423_s4  ;;  %s2466_s28 = sshll.u32 %s2933_s13, 10 }
  0x58   : > { %v3082_v9 = vpack.c.bf16 %v210_v7, %v208_v6  ;;  %230 = vmatprep.subr.bf16.mxu1 %v3078_v4  ;;  %v3086_v12 = vpack.c.bf16 %v209_v11, %v207_v10  ;;  %v3088_v13 = vld [vmem:[%s176_s5] sm:$0xff]  ;;  %v3090_v14 = vld [vmem:[%s176_s5 + $0x8] sm:$0xff]  ;;  %s2317_s17 = sshll.u32 %s201_s8, 4  ;;  %s3452_s27 = scalar_lea.hbm %s3498_s2, %s2466_s28  ;;  %s3447_s17 = int_to_ptr.vmem [resolvable:$true] %s2317_s17 }
  0x59   : > { %231 = vmatpush1.bf16.msra.mxu1 %v3080_v8  ;;  %v3095_v15 = vpack.c.bf16 %v3090_v14, %v3088_v13  ;;  %s2304_s29 = scalar_lea.sflag [#allocation5], %s3060_s30  ;;  %s2812_s13 = scalar_lea.vmem %s3447_s17, 1024 }
  0x5a   : > { %232 = vmatprep.subr.bf16.mxu1 %v3082_v9  ;;  %p2813_p13 = scmp.ne.s32.totalorder %s3447_s17, %s2812_s13  ;;  %p3508_p1 = scmp.ne.s32.totalorder %s3503_s21, 0 }
  0x5b   : > { %v228_v17 = vsel %vm226_vm0, %v3095_v15, 0  ;;  %s2894_s6 = smov [#allocation8]  }
  0x5c   : > { %p2814_p11 = pnand %p2813_p13, %p3508_p1  ;;  %s2816_s7 = sshll.u32 %s2894_s6, 4  ;;  %s2817_s7 = int_to_ptr.vmem [resolvable:$false] %s2816_s7 }
  0x5d   : > { %233 = vmatpush1.bf16.msra.mxu1 %v3086_v12  ;;  %s2818_s14 = scalar_lea.vmem %s2817_s7, 2048  ;;  %p2819_p5 = scmp.lt.s32.totalorder %s3447_s17, %s2817_s7 }
  0x5e   : > { %2497 = vmatprep.subr.bf16.mxu1 %v2891_v16  ;;  %p2815_p10 = pneg %p2814_p11  ;;  %p2820_p7 = scmp.lt.s32.totalorder %s2818_s14, %s2812_s13 }
  0x60   : > { %2426 = vmatmul.mubr.msk.bf16.vlgmr.msra.gmra.mrb[0].mxu1 %vm226_vm0, %v3095_v15  ;;  %p2821_p9 = por %p2820_p7, %p2819_p5 }
  0x61   : > { %2499 = vmatprep.mubr.msk.bf16.mxu1 %vm2892_vm1, %v2891_v16 }
  0x62   : > { %p2822_p3 = pnand %p2821_p9, %p2815_p10 }
  0x66   : > { %2498 = vmatpush3.bf16.xpose.msra.mxu1 %v228_v17 }
  0x67   : > { %436 = vmatprep.subr.bf16.mxu1 %v3078_v4 }
  0x6d   : > { %2500 = vmatmul.mubr.msk.bf16.vlgmr.msra.gmra.mrb[4].mxu1 %vm226_vm0, %v3095_v15 }
  0x6e   : > { %437 = vmatpush1.bf16.xpose.msra.mxu1 %v3080_v8 }
  0x6f   : > { %438 = vmatprep.subr.bf16.mxu1 %v3082_v9 }
  0x76   : > { %439 = vmatpush1.bf16.xpose.msra.mxu1 %v3086_v12 }
 0x133   : > { %v3111_v18 = vpop.f32.mrb[0].mxu1 }
 0x134   : > { %v3113_v19 = vpop.f32.mrb[1].mxu1 }
 0x135   : > { %v268_v20 = vpop.f32.mrb[2].mxu1 }
 0x136   : > { %v273_v21 = vmax.f32 %v3111_v18, %v268_v20  ;;  %v3116_v22 = vpop.f32.mrb[3].mxu1 }
 0x137   : > { %v280_v23 = vmax.f32 %v3113_v19, %v3116_v22 }
 0x138   : > { %v274_v24 = vrot.slane %v273_v21, 4 }
 0x139   : > { %v281_v25 = vrot.slane %v280_v23, 4 }
 0x13a   : > { %v275_v26 = vmax.f32 %v273_v21, %v274_v24 }
 0x13b   : > { %v282_v27 = vmax.f32 %v280_v23, %v281_v25 }
 0x13c   : > { %v276_v28 = vrot.slane %v275_v26, 2 }
 0x13d   : > { %v283_v29 = vrot.slane %v282_v27, 2 }
 0x13e   : > { %v277_v30 = vmax.f32 %v275_v26, %v276_v28 }
 0x13f   : > { %v284_v31 = vmax.f32 %v282_v27, %v283_v29 }
 0x140   : > { %v278_v32 = vrot.slane %v277_v30, 1  ;;  %v357_v33 = vpop.f32.mrb[4].mxu1 }
 0x141   : > { %v285_v34 = vrot.slane %v284_v31, 1  ;;  %v2501_v35 = vpop.f32.mrb[5].mxu1 }
 0x142   : > { %v279_v36 = vmax.f32 %v277_v30, %v278_v32  ;;  %v360_v37 = vpop.f32.mrb[6].mxu1 }
 0x143   : > { %v286_v38 = vmax.f32 %v284_v31, %v285_v34  ;;  %v364_v39 = vpack.c.bf16 %v360_v37, %v357_v33  ;;  %v2502_v40 = vpop.f32.mrb[7].mxu1 }
 0x144   : > { %v287_v41 = vsub.f32 %v3111_v18, %v279_v36  ;;  %v289_v42 = vsub.f32 %v268_v20, %v279_v36 }
 0x145   : > { %v288_v43 = vsub.f32 %v3113_v19, %v286_v38  ;;  %v290_v44 = vsub.f32 %v3116_v22, %v286_v38 }
 0x146   : > { %v291_v45 = vmul.f32 100.0, %v287_v41  ;;  %v293_v46 = vmul.f32 100.0, %v289_v42 }
 0x147   : > { %v292_v47 = vmul.f32 100.0, %v288_v43  ;;  %v294_v48 = vmul.f32 100.0, %v290_v44 }
 0x148   : > { %v295_v49 = vmul.f32 1.442695, %v291_v45  ;;  %v299_v50 = vmul.f32 1.442695, %v293_v46 }
 0x149   : > { %v297_v51 = vmul.f32 1.442695, %v292_v47  ;;  %v301_v52 = vmul.f32 1.442695, %v294_v48 }
 0x14a   : > { %2648 = vpow2.f32 %v295_v49 }
 0x14b   : > { %2650 = vpow2.f32 %v299_v50 }
 0x14c   : > { %2652 = vpow2.f32 %v297_v51 }
 0x14d   : > { %2654 = vpow2.f32 %v301_v52 }
 0x154   : > { %v2649_v53 = vpop.eup %2648 }
 0x155   : > { %v2651_v54 = vpop.eup %2650 }
 0x156   : > { %v2653_v55 = vpop.eup %2652  ;;  %v303_v56 = vadd.f32 %v2651_v54, %v2649_v53 }
 0x157   : > { %v2655_v57 = vpop.eup %2654 }
 0x158   : > { %v304_v58 = vrot.slane %v303_v56, 4  ;;  %v310_v59 = vadd.f32 %v2655_v57, %v2653_v55 }
 0x15a   : > { %v305_v60 = vadd.f32 %v304_v58, %v303_v56  ;;  %v311_v61 = vrot.slane %v310_v59, 4 }
 0x15c   : > { %v306_v62 = vrot.slane %v305_v60, 2  ;;  %v312_v63 = vadd.f32 %v311_v61, %v310_v59 }
 0x15e   : > { %v307_v1 = vadd.f32 %v306_v62, %v305_v60  ;;  %v313_v2 = vrot.slane %v312_v63, 2 }
 0x160   : > { %v308_v3 = vrot.slane %v307_v1, 1  ;;  %v314_v5 = vadd.f32 %v313_v2, %v312_v63 }
 0x162   : > { %v309_v6 = vadd.f32 %v308_v3, %v307_v1  ;;  %v315_v7 = vrot.slane %v314_v5, 1 }
 0x164   : > { %2656 = vrcp.f32 %v309_v6  ;;  %v316_v10 = vadd.f32 %v315_v7, %v314_v5 }
 0x166   : > { %2658 = vrcp.f32 %v316_v10 }
 0x16e   : > { %v2657_v11 = vpop.eup %2656 }
 0x16f   : > { %v321_v17 = vmul.f32 %v2657_v11, %v2651_v54  ;;  %v318_v21 = vmul.f32 %v2657_v11, %v2649_v53 }
 0x170   : > { %v2659_v23 = vpop.eup %2658 }
 0x171   : > { %v416_v24 = vmul.f32 %v321_v17, %v268_v20  ;;  %v320_v25 = vmul.f32 %v2659_v23, %v2653_v55  ;;  %v322_v26 = vmul.f32 %v2659_v23, %v2655_v57  ;;  %v365_v27 = vpack.c.bf16 %v321_v17, %v318_v21 }
 0x172   : > { %v414_v28 = vmul.f32 %v318_v21, %v3111_v18 }
 0x173   : > { %v366_v29 = vpack.c.bf16 %v322_v26, %v320_v25  ;;  %v415_v30 = vmul.f32 %v320_v25, %v3113_v19  ;;  %v417_v31 = vmul.f32 %v322_v26, %v3116_v22 }
 0x175   : > { %371 = vmatprep.subr.bf16.mxu0 %v366_v29 }
 0x176   : > { %372 = vmatpush1.bf16.msra.mxu0 %v365_v27 }
 0x177   : > { %2503 = vmatprep.subr.bf16.mxu0 %v2891_v16 }
 0x179   : > { %2428 = vmatmul.mubr.msk.bf16.vlgmr.msra.gmra.mrb[0].mxu0 %vm367_vm2, %v364_v39 }
 0x17a   : > { %2504 = vmatpush3.bf16.msra.mxu0 %v3095_v15  ;;  %2505 = vmatprep.mubr.msk.bf16.mxu0 %vm2892_vm1, %v2891_v16 }
 0x17b   : > { %539 = vmatprep.subr.bf16.mxu0 %v3078_v4 }
 0x24c   : > { %v405_v18 = vpop.f32.mrb[0].mxu0 }
 0x24d   : > { %v406_v20 = vadd.f32 1e-06, %v405_v18  ;;  %v407_v32 = vpop.f32.mrb[1].mxu0 }
 0x24e   : > { %v408_v19 = vadd.f32 1e-06, %v407_v32  ;;  %v409_v33 = vpop.f32.mrb[2].mxu0 }
 0x24f   : > { %2660 = vrcp.f32 %v406_v20  ;;  %v410_v22 = vadd.f32 1e-06, %v409_v33  ;;  %v411_v34 = vpop.f32.mrb[3].mxu0 }
 0x250   : > { %2662 = vrcp.f32 %v408_v19  ;;  %v412_v35 = vadd.f32 1e-06, %v411_v34 }
 0x251   : > { %2664 = vrcp.f32 %v410_v22 }
 0x252   : > { %2666 = vrcp.f32 %v412_v35 }
 0x259   : > { %v2661_v36 = vpop.eup %2660 }
 0x25a   : > { %v2663_v37 = vpop.eup %2662  ;;  %v3132_v15 = vmul.f32 %v2661_v36, %v414_v28 }
 0x25b   : > { %v2665_v38 = vpop.eup %2664  ;;  %v3134_v39 = vmul.f32 %v2663_v37, %v415_v30 }
 0x25c   : > { %v2667_v40 = vpop.eup %2666  ;;  %v3136_v41 = vmul.f32 %v2665_v38, %v416_v24 }
 0x25d   : > { %v3138_v42 = vmul.f32 %v2667_v40, %v417_v31 }
 0x25e   : > { %v426_v44 = vpack.c.bf16 %v3136_v41, %v3132_v15 }
 0x25f   : > { %v427_v43 = vpack.c.bf16 %v3138_v42, %v3134_v39 }
 0x261   : > { %440 = vmatprep.subr.bf16.mxu1 %v427_v43  ;;  %468 = vmatprep.mubr.bf16.mxu1 %v427_v43 }
 0x262   : > { %441 = vmatpush1.bf16.xpose.msra.mxu1 %v426_v44 }
 0x263   : > { %627 = vmatprep.subr.bf16.mxu1 %v427_v43 }
 0x269   : > { %469 = vmatmul.mubr.bf16.vlgmr.msra.gmra.mrb[8].mxu1 %v426_v44 }
 0x26a   : > { %628 = vmatpush1.bf16.msra.mxu1 %v426_v44  ;;  %659 = vmatprep.mubr.bf16.mxu1 %v2890_v0 }
 0x26b   : > { %2515 = vmatprep.subr.bf16.mxu1 %v2891_v16 }
 0x33c   : > { %v470_v45 = vpop.f32.mrb[8].mxu1 }
 0x33d   : > { %v472_v46 = vpop.f32.mrb[9].mxu1  ;;  %v525_v57 = vmul.f32 %v470_v45, %v3088_v13 }
 0x33e   : > { %v473_v47 = vpop.f32.mrb[10].mxu1 }
 0x33f   : > { %v475_v48 = vpop.f32.mrb[11].mxu1  ;;  %v477_v49 = vpack.c.bf16 %v473_v47, %v470_v45  ;;  %v526_v59 = vmul.f32 %v473_v47, %v3090_v14 }
 0x341   : > { %479 = vrot.lane.b32.xlu0 %v477_v49, %s2893_s20 }
 0x3b3   : > { %v480_v50 = vpop.permute.xlu0 %479 }
 0x3b4   : > { %2506 = vmatmul.mubr.msk.bf16.vlgmr.msra.gmra.mrb[4].mxu0 %vm367_vm2, %v480_v50 }
 0x3b5   : > { %540 = vmatpush1.bf16.msra.mxu0 %v3080_v8  ;;  %571 = vmatprep.mubr.bf16.mxu0 %v2890_v0 }
 0x3b6   : > { %541 = vmatprep.subr.bf16.mxu0 %v3082_v9 }
 0x3b9   : > { %542 = vmatpush1.bf16.msra.mxu0 %v3086_v12 }
 0x3ba   : > { %2509 = vmatprep.subr.bf16.mxu0 %v2891_v16 }
 0x487   : > { %v518_v51 = vpop.f32.mrb[4].mxu0 }
 0x488   : > { %v519_v52 = vadd.f32 1e-06, %v518_v51  ;;  %v2507_v53 = vpop.f32.mrb[5].mxu0 }
 0x489   : > { %v521_v54 = vpop.f32.mrb[6].mxu0 }
 0x48a   : > { %2668 = vrcp.f32 %v519_v52  ;;  %v522_v55 = vadd.f32 1e-06, %v521_v54  ;;  %v2508_v56 = vpop.f32.mrb[7].mxu0 }
 0x48c   : > { %2670 = vrcp.f32 %v522_v55 }
 0x494   : > { %v2669_v58 = vpop.eup %2668 }
 0x495   : > { %v3155_v60 = vmul.f32 %v2669_v58, %v525_v57 }
 0x496   : > { %v2671_v61 = vpop.eup %2670 }
 0x497   : > { %v3157_v62 = vmul.f32 %v2671_v61, %v526_v59 }
 0x499   : > { %v535_v63 = vpack.c.bf16 %v3157_v62, %v3155_v60 }
 0x49b   : > { %2430 = vmatmul.mubr.msk.bf16.vlgmr.msra.gmra.mrb[8].mxu0 %vm226_vm0, %v535_v63  ;;  %v537_v1 = vsel %vm226_vm0, %v535_v63, 0 }
 0x49c   : > { %2510 = vmatpush3.bf16.xpose.msra.mxu0 %v537_v1  ;;  %2511 = vmatprep.mubr.msk.bf16.mxu0 %vm2892_vm1, %v2891_v16 }
 0x49d   : > { %692 = vmatprep.subr.bf16.mxu0 %v3078_v4 }
 0x4a3   : > { %2512 = vmatmul.mubr.msk.bf16.vlgmr.msra.gmra.mrb[12].mxu0 %vm226_vm0, %v535_v63 }
 0x4a4   : > { %693 = vmatpush1.bf16.xpose.msra.mxu0 %v3080_v8 }
 0x4a5   : > { %694 = vmatprep.subr.bf16.mxu0 %v3082_v9 }
 0x4ac   : > { %695 = vmatpush1.bf16.xpose.msra.mxu0 %v3086_v12 }
 0x56e   : > { %v573_v13 = vpop.f32.mrb[8].mxu0 }
 0x56f   : > { %v575_v14 = vpop.f32.mrb[9].mxu0  ;;  %v670_v29 = vmul.f32 %v573_v13, %v3132_v15 }
 0x570   : > { %v577_v2 = vpop.f32.mrb[10].mxu0  ;;  %v671_v31 = vmul.f32 %v575_v14, %v3134_v39 }
 0x571   : > { %v579_v3 = vpop.f32.mrb[11].mxu0  ;;  %v672_v20 = vmul.f32 %v577_v2, %v3136_v41 }
 0x572   : > { %v673_v33 = vmul.f32 %v579_v3, %v3138_v42 }
 0x576   : > { %v616_v5 = vpop.f32.mrb[12].mxu0 }
 0x577   : > { %v2513_v6 = vpop.f32.mrb[13].mxu0 }
 0x578   : > { %v619_v7 = vpop.f32.mrb[14].mxu0 }
 0x579   : > { %v623_v10 = vpack.c.bf16 %v619_v7, %v616_v5  ;;  %v2514_v11 = vpop.f32.mrb[15].mxu0 }
 0x57b   : > { %2432 = vmatmul.mubr.msk.bf16.vlgmr.msra.gmra.mrb[12].mxu1 %vm367_vm2, %v623_v10 }
 0x57c   : > { %2516 = vmatpush3.bf16.msra.mxu1 %v535_v63  ;;  %2517 = vmatprep.mubr.msk.bf16.mxu1 %vm2892_vm1, %v2891_v16 }
 0x57d   : > { %795 = vmatprep.subr.bf16.mxu1 %v3078_v4 }
 0x64e   : > { %v661_v17 = vpop.f32.mrb[12].mxu1 }
 0x64f   : > { %v662_v21 = vadd.f32 1e-06, %v661_v17  ;;  %v663_v23 = vpop.f32.mrb[13].mxu1 }
 0x650   : > { %v664_v24 = vadd.f32 1e-06, %v663_v23  ;;  %v665_v25 = vpop.f32.mrb[14].mxu1 }
 0x651   : > { %2672 = vrcp.f32 %v662_v21  ;;  %v666_v26 = vadd.f32 1e-06, %v665_v25  ;;  %v667_v27 = vpop.f32.mrb[15].mxu1 }
 0x652   : > { %2674 = vrcp.f32 %v664_v24  ;;  %v668_v28 = vadd.f32 1e-06, %v667_v27 }
 0x653   : > { %2676 = vrcp.f32 %v666_v26 }
 0x654   : > { %2678 = vrcp.f32 %v668_v28 }
 0x65b   : > { %v2673_v30 = vpop.eup %2672 }
 0x65c   : > { %v2675_v18 = vpop.eup %2674  ;;  %v3177_v32 = vmul.f32 %v2673_v30, %v670_v29 }
 0x65d   : > { %v2677_v19 = vpop.eup %2676  ;;  %v3180_v22 = vmul.f32 %v2675_v18, %v671_v31 }
 0x65e   : > { %v2679_v34 = vpop.eup %2678  ;;  %v3182_v35 = vmul.f32 %v2677_v19, %v672_v20 }
 0x65f   : > { %v3184_v36 = vmul.f32 %v2679_v34, %v673_v33 }
 0x660   : > { %v682_v15 = vpack.c.bf16 %v3182_v35, %v3177_v32 }
 0x661   : > { %v683_v37 = vpack.c.bf16 %v3184_v36, %v3180_v22 }
 0x663   : > { %696 = vmatprep.subr.bf16.mxu0 %v683_v37  ;;  %724 = vmatprep.mubr.bf16.mxu0 %v683_v37 }
 0x664   : > { %697 = vmatpush1.bf16.xpose.msra.mxu0 %v682_v15 }
 0x665   : > { %883 = vmatprep.subr.bf16.mxu0 %v683_v37 }
 0x66b   : > { %725 = vmatmul.mubr.bf16.vlgmr.msra.gmra.mrb[16].mxu0 %v682_v15 }
 0x66c   : > { %884 = vmatpush1.bf16.msra.mxu0 %v682_v15  ;;  %915 = vmatprep.mubr.bf16.mxu0 %v2890_v0 }
 0x66d   : > { %2527 = vmatprep.subr.bf16.mxu0 %v2891_v16 }
 0x73e   : > { %v726_v38 = vpop.f32.mrb[16].mxu0 }
 0x73f   : > { %v728_v39 = vpop.f32.mrb[17].mxu0  ;;  %v781_v50 = vmul.f32 %v726_v38, %v3155_v60 }
 0x740   : > { %v729_v40 = vpop.f32.mrb[18].mxu0 }
 0x741   : > { %v733_v41 = vpack.c.bf16 %v729_v40, %v726_v38  ;;  %v731_v42 = vpop.f32.mrb[19].mxu0  ;;  %v782_v52 = vmul.f32 %v729_v40, %v3157_v62 }
 0x743   : > { %735 = vrot.lane.b32.xlu0 %v733_v41, %s2893_s20 }
 0x7b5   : > { %v736_v43 = vpop.permute.xlu0 %735 }
 0x7b6   : > { %2518 = vmatmul.mubr.msk.bf16.vlgmr.msra.gmra.mrb[16].mxu1 %vm367_vm2, %v736_v43 }
 0x7b7   : > { %796 = vmatpush1.bf16.msra.mxu1 %v3080_v8  ;;  %827 = vmatprep.mubr.bf16.mxu1 %v2890_v0 }
 0x7b8   : > { %797 = vmatprep.subr.bf16.mxu1 %v3082_v9 }
 0x7bb   : > { %798 = vmatpush1.bf16.msra.mxu1 %v3086_v12 }
 0x7bc   : > { %2521 = vmatprep.subr.bf16.mxu1 %v2891_v16 }
 0x889   : > { %v774_v44 = vpop.f32.mrb[16].mxu1 }
 0x88a   : > { %v775_v45 = vadd.f32 1e-06, %v774_v44  ;;  %v2519_v46 = vpop.f32.mrb[17].mxu1 }
 0x88b   : > { %v777_v47 = vpop.f32.mrb[18].mxu1 }
 0x88c   : > { %2680 = vrcp.f32 %v775_v45  ;;  %v778_v48 = vadd.f32 1e-06, %v777_v47  ;;  %v2520_v49 = vpop.f32.mrb[19].mxu1 }
 0x88e   : > { %2682 = vrcp.f32 %v778_v48 }
 0x896   : > { %v2681_v51 = vpop.eup %2680 }
 0x897   : > { %v3201_v53 = vmul.f32 %v2681_v51, %v781_v50 }
 0x898   : > { %v2683_v54 = vpop.eup %2682 }
 0x899   : > { %v3203_v55 = vmul.f32 %v2683_v54, %v782_v52 }
 0x89b   : > { %v791_v56 = vpack.c.bf16 %v3203_v55, %v3201_v53 }
 0x89d   : > { %2434 = vmatmul.mubr.msk.bf16.vlgmr.msra.gmra.mrb[20].mxu1 %vm226_vm0, %v791_v56  ;;  %v793_v57 = vsel %vm226_vm0, %v791_v56, 0 }
 0x89e   : > { %2522 = vmatpush3.bf16.xpose.msra.mxu1 %v793_v57  ;;  %2523 = vmatprep.mubr.msk.bf16.mxu1 %vm2892_vm1, %v2891_v16 }
 0x89f   : > { %948 = vmatprep.subr.bf16.mxu1 %v3078_v4 }
 0x8a5   : > { %2524 = vmatmul.mubr.msk.bf16.vlgmr.msra.gmra.mrb[24].mxu1 %vm226_vm0, %v791_v56 }
 0x8a6   : > { %949 = vmatpush1.bf16.xpose.msra.mxu1 %v3080_v8 }
 0x8a7   : > { %950 = vmatprep.subr.bf16.mxu1 %v3082_v9 }
 0x8ae   : > { %951 = vmatpush1.bf16.xpose.msra.mxu1 %v3086_v12 }
 0x970   : > { %v829_v58 = vpop.f32.mrb[20].mxu1 }
 0x971   : > { %v831_v59 = vpop.f32.mrb[21].mxu1  ;;  %v926_v21 = vmul.f32 %v829_v58, %v3177_v32 }
 0x972   : > { %v833_v60 = vpop.f32.mrb[22].mxu1  ;;  %v927_v24 = vmul.f32 %v831_v59, %v3180_v22 }
 0x973   : > { %v835_v61 = vpop.f32.mrb[23].mxu1  ;;  %v928_v26 = vmul.f32 %v833_v60, %v3182_v35 }
 0x974   : > { %v929_v29 = vmul.f32 %v835_v61, %v3184_v36 }
 0x978   : > { %v872_v62 = vpop.f32.mrb[24].mxu1 }
 0x979   : > { %v2525_v63 = vpop.f32.mrb[25].mxu1 }
 0x97a   : > { %v875_v1 = vpop.f32.mrb[26].mxu1 }
 0x97b   : > { %v879_v13 = vpack.c.bf16 %v875_v1, %v872_v62  ;;  %v2526_v14 = vpop.f32.mrb[27].mxu1 }
 0x97d   : > { %2436 = vmatmul.mubr.msk.bf16.vlgmr.msra.gmra.mrb[20].mxu0 %vm367_vm2, %v879_v13 }
 0x97e   : > { %2528 = vmatpush3.bf16.msra.mxu0 %v791_v56  ;;  %2529 = vmatprep.mubr.msk.bf16.mxu0 %vm2892_vm1, %v2891_v16 }
 0x97f   : > { %1051 = vmatprep.subr.bf16.mxu0 %v3078_v4 }
 0xa50   : > { %v917_v2 = vpop.f32.mrb[20].mxu0 }
 0xa51   : > { %v918_v3 = vadd.f32 1e-06, %v917_v2  ;;  %v919_v5 = vpop.f32.mrb[21].mxu0 }
 0xa52   : > { %v920_v6 = vadd.f32 1e-06, %v919_v5  ;;  %v921_v7 = vpop.f32.mrb[22].mxu0 }
 0xa53   : > { %2684 = vrcp.f32 %v918_v3  ;;  %v922_v10 = vadd.f32 1e-06, %v921_v7  ;;  %v923_v11 = vpop.f32.mrb[23].mxu0 }
 0xa54   : > { %2686 = vrcp.f32 %v920_v6  ;;  %v924_v17 = vadd.f32 1e-06, %v923_v11 }
 0xa55   : > { %2688 = vrcp.f32 %v922_v10 }
 0xa56   : > { %2690 = vrcp.f32 %v924_v17 }
 0xa5d   : > { %v2685_v23 = vpop.eup %2684 }
 0xa5e   : > { %v2687_v25 = vpop.eup %2686  ;;  %v3223_v27 = vmul.f32 %v2685_v23, %v926_v21 }
 0xa5f   : > { %v2689_v28 = vpop.eup %2688  ;;  %v3226_v30 = vmul.f32 %v2687_v25, %v927_v24 }
 0xa60   : > { %v2691_v31 = vpop.eup %2690  ;;  %v3228_v18 = vmul.f32 %v2689_v28, %v928_v26 }
 0xa61   : > { %v3230_v20 = vmul.f32 %v2691_v31, %v929_v29 }
 0xa62   : > { %v938_v19 = vpack.c.bf16 %v3228_v18, %v3223_v27 }
 0xa63   : > { %v939_v32 = vpack.c.bf16 %v3230_v20, %v3226_v30 }
 0xa65   : > { %952 = vmatprep.subr.bf16.mxu1 %v939_v32  ;;  %980 = vmatprep.mubr.bf16.mxu1 %v939_v32 }
 0xa66   : > { %953 = vmatpush1.bf16.xpose.msra.mxu1 %v938_v19 }
 0xa67   : > { %1139 = vmatprep.subr.bf16.mxu1 %v939_v32 }
 0xa6d   : > { %981 = vmatmul.mubr.bf16.vlgmr.msra.gmra.mrb[28].mxu1 %v938_v19 }
 0xa6e   : > { %1140 = vmatpush1.bf16.msra.mxu1 %v938_v19  ;;  %1171 = vmatprep.mubr.bf16.mxu1 %v2890_v0 }
 0xa6f   : > { %2539 = vmatprep.subr.bf16.mxu1 %v2891_v16 }
 0xb40   : > { %v982_v33 = vpop.f32.mrb[28].mxu1 }
 0xb41   : > { %v984_v22 = vpop.f32.mrb[29].mxu1  ;;  %v1037_v43 = vmul.f32 %v982_v33, %v3201_v53 }
 0xb42   : > { %v985_v34 = vpop.f32.mrb[30].mxu1 }
 0xb43   : > { %v987_v35 = vpop.f32.mrb[31].mxu1  ;;  %v989_v36 = vpack.c.bf16 %v985_v34, %v982_v33  ;;  %v1038_v45 = vmul.f32 %v985_v34, %v3203_v55 }
 0xb45   : > { %991 = vrot.lane.b32.xlu1 %v989_v36, %s2893_s20 }
 0xbb7   : > { %v992_v37 = vpop.permute.xlu1 %991 }
 0xbb8   : > { %2530 = vmatmul.mubr.msk.bf16.vlgmr.msra.gmra.mrb[24].mxu0 %vm367_vm2, %v992_v37 }
 0xbb9   : > { %1052 = vmatpush1.bf16.msra.mxu0 %v3080_v8  ;;  %1083 = vmatprep.mubr.bf16.mxu0 %v2890_v0 }
 0xbba   : > { %1053 = vmatprep.subr.bf16.mxu0 %v3082_v9 }
 0xbbd   : > { %1054 = vmatpush1.bf16.msra.mxu0 %v3086_v12 }
 0xbbe   : > { %2533 = vmatprep.subr.bf16.mxu0 %v2891_v16 }
 0xc8b   : > { %v1030_v15 = vpop.f32.mrb[24].mxu0 }
 0xc8c   : > { %v1031_v38 = vadd.f32 1e-06, %v1030_v15  ;;  %v2531_v39 = vpop.f32.mrb[25].mxu0 }
 0xc8d   : > { %v1033_v40 = vpop.f32.mrb[26].mxu0 }
 0xc8e   : > { %2692 = vrcp.f32 %v1031_v38  ;;  %v1034_v41 = vadd.f32 1e-06, %v1033_v40  ;;  %v2532_v42 = vpop.f32.mrb[27].mxu0 }
 0xc90   : > { %2694 = vrcp.f32 %v1034_v41 }
 0xc98   : > { %v2693_v44 = vpop.eup %2692 }
 0xc99   : > { %v3247_v46 = vmul.f32 %v2693_v44, %v1037_v43 }
 0xc9a   : > { %v2695_v47 = vpop.eup %2694 }
 0xc9b   : > { %v3249_v48 = vmul.f32 %v2695_v47, %v1038_v45 }
 0xc9d   : > { %v1047_v49 = vpack.c.bf16 %v3249_v48, %v3247_v46 }
 0xc9f   : > { %2438 = vmatmul.mubr.msk.bf16.vlgmr.msra.gmra.mrb[28].mxu0 %vm226_vm0, %v1047_v49  ;;  %v1049_v50 = vsel %vm226_vm0, %v1047_v49, 0 }
 0xca0   : > { %2534 = vmatpush3.bf16.xpose.msra.mxu0 %v1049_v50  ;;  %2535 = vmatprep.mubr.msk.bf16.mxu0 %vm2892_vm1, %v2891_v16 }
 0xca1   : > { %1204 = vmatprep.subr.bf16.mxu0 %v3078_v4 }
 0xca7   : > { %2536 = vmatmul.mubr.msk.bf16.vlgmr.msra.gmra.mrb[32].mxu0 %vm226_vm0, %v1047_v49 }
 0xca8   : > { %1205 = vmatpush1.bf16.xpose.msra.mxu0 %v3080_v8 }
 0xca9   : > { %1206 = vmatprep.subr.bf16.mxu0 %v3082_v9 }
 0xcb0   : > { %1207 = vmatpush1.bf16.xpose.msra.mxu0 %v3086_v12 }
 0xd72   : > { %v1085_v51 = vpop.f32.mrb[28].mxu0 }
 0xd73   : > { %v1087_v52 = vpop.f32.mrb[29].mxu0  ;;  %v1182_v3 = vmul.f32 %v1085_v51, %v3223_v27 }
 0xd74   : > { %v1089_v53 = vpop.f32.mrb[30].mxu0  ;;  %v1183_v6 = vmul.f32 %v1087_v52, %v3226_v30 }
 0xd75   : > { %v1091_v54 = vpop.f32.mrb[31].mxu0  ;;  %v1184_v10 = vmul.f32 %v1089_v53, %v3228_v18 }
 0xd76   : > { %v1185_v21 = vmul.f32 %v1091_v54, %v3230_v20 }
 0xd7a   : > { %v1128_v55 = vpop.f32.mrb[32].mxu0 }
 0xd7b   : > { %v2537_v56 = vpop.f32.mrb[33].mxu0 }
 0xd7c   : > { %v1131_v57 = vpop.f32.mrb[34].mxu0 }
 0xd7d   : > { %v1135_v58 = vpack.c.bf16 %v1131_v57, %v1128_v55  ;;  %v2538_v59 = vpop.f32.mrb[35].mxu0 }
 0xd7f   : > { %2440 = vmatmul.mubr.msk.bf16.vlgmr.msra.gmra.mrb[32].mxu1 %vm367_vm2, %v1135_v58 }
 0xd80   : > { %2540 = vmatpush3.bf16.msra.mxu1 %v1047_v49  ;;  %2541 = vmatprep.mubr.msk.bf16.mxu1 %vm2892_vm1, %v2891_v16 }
 0xd81   : > { %1307 = vmatprep.subr.bf16.mxu1 %v3078_v4 }
 0xe52   : > { %v1173_v60 = vpop.f32.mrb[32].mxu1 }
 0xe53   : > { %v1174_v61 = vadd.f32 1e-06, %v1173_v60  ;;  %v1175_v62 = vpop.f32.mrb[33].mxu1 }
 0xe54   : > { %v1176_v63 = vadd.f32 1e-06, %v1175_v62  ;;  %v1177_v1 = vpop.f32.mrb[34].mxu1 }
 0xe55   : > { %2696 = vrcp.f32 %v1174_v61  ;;  %v1178_v13 = vadd.f32 1e-06, %v1177_v1  ;;  %v1179_v14 = vpop.f32.mrb[35].mxu1 }
 0xe56   : > { %2698 = vrcp.f32 %v1176_v63  ;;  %v1180_v2 = vadd.f32 1e-06, %v1179_v14 }
 0xe57   : > { %2700 = vrcp.f32 %v1178_v13 }
 0xe58   : > { %2702 = vrcp.f32 %v1180_v2 }
 0xe5f   : > { %v2697_v5 = vpop.eup %2696 }
 0xe60   : > { %v2699_v7 = vpop.eup %2698  ;;  %v3269_v11 = vmul.f32 %v2697_v5, %v1182_v3 }
 0xe61   : > { %v2701_v17 = vpop.eup %2700  ;;  %v3272_v23 = vmul.f32 %v2699_v7, %v1183_v6 }
 0xe62   : > { %v2703_v24 = vpop.eup %2702  ;;  %v3274_v25 = vmul.f32 %v2701_v17, %v1184_v10 }
 0xe63   : > { %v3276_v26 = vmul.f32 %v2703_v24, %v1185_v21 }
 0xe64   : > { %v1194_v28 = vpack.c.bf16 %v3274_v25, %v3269_v11 }
 0xe65   : > { %v1195_v27 = vpack.c.bf16 %v3276_v26, %v3272_v23 }
 0xe67   : > { %1208 = vmatprep.subr.bf16.mxu0 %v1195_v27  ;;  %1236 = vmatprep.mubr.bf16.mxu0 %v1195_v27 }
 0xe68   : > { %1209 = vmatpush1.bf16.xpose.msra.mxu0 %v1194_v28 }
 0xe69   : > { %1395 = vmatprep.subr.bf16.mxu0 %v1195_v27 }
 0xe6f   : > { %1237 = vmatmul.mubr.bf16.vlgmr.msra.gmra.mrb[36].mxu0 %v1194_v28 }
 0xe70   : > { %1396 = vmatpush1.bf16.msra.mxu0 %v1194_v28  ;;  %1427 = vmatprep.mubr.bf16.mxu0 %v2890_v0 }
 0xe71   : > { %2551 = vmatprep.subr.bf16.mxu0 %v2891_v16 }
 0xf42   : > { %v1238_v29 = vpop.f32.mrb[36].mxu0 }
 0xf43   : > { %v1240_v30 = vpop.f32.mrb[37].mxu0  ;;  %v1293_v37 = vmul.f32 %v1238_v29, %v3247_v46 }
 0xf44   : > { %v1241_v31 = vpop.f32.mrb[38].mxu0 }
 0xf45   : > { %v1245_v18 = vpack.c.bf16 %v1241_v31, %v1238_v29  ;;  %v1243_v20 = vpop.f32.mrb[39].mxu0  ;;  %v1294_v38 = vmul.f32 %v1241_v31, %v3249_v48 }
 0xf47   : > { %1247 = vrot.lane.b32.xlu1 %v1245_v18, %s2893_s20 }
 0xfb9   : > { %v1248_v32 = vpop.permute.xlu1 %1247 }
 0xfba   : > { %2542 = vmatmul.mubr.msk.bf16.vlgmr.msra.gmra.mrb[36].mxu1 %vm367_vm2, %v1248_v32 }
 0xfbb   : > { %1308 = vmatpush1.bf16.msra.mxu1 %v3080_v8  ;;  %1339 = vmatprep.mubr.bf16.mxu1 %v2890_v0 }
 0xfbc   : > { %1309 = vmatprep.subr.bf16.mxu1 %v3082_v9 }
 0xfbf   : > { %1310 = vmatpush1.bf16.msra.mxu1 %v3086_v12 }
 0xfc0   : > { %2545 = vmatprep.subr.bf16.mxu1 %v2891_v16 }
0x108d   : > { %v1286_v19 = vpop.f32.mrb[36].mxu1 }
0x108e   : > { %v1287_v33 = vadd.f32 1e-06, %v1286_v19  ;;  %v2543_v22 = vpop.f32.mrb[37].mxu1 }
0x108f   : > { %v1289_v34 = vpop.f32.mrb[38].mxu1 }
0x1090   : > { %2704 = vrcp.f32 %v1287_v33  ;;  %v1290_v35 = vadd.f32 1e-06, %v1289_v34  ;;  %v2544_v36 = vpop.f32.mrb[39].mxu1 }
0x1092   : > { %2706 = vrcp.f32 %v1290_v35 }
0x109a   : > { %v2705_v15 = vpop.eup %2704 }
0x109b   : > { %v3293_v39 = vmul.f32 %v2705_v15, %v1293_v37 }
0x109c   : > { %v2707_v40 = vpop.eup %2706 }
0x109d   : > { %v3295_v41 = vmul.f32 %v2707_v40, %v1294_v38 }
0x109f   : > { %v1303_v42 = vpack.c.bf16 %v3295_v41, %v3293_v39 }
0x10a1   : > { %2442 = vmatmul.mubr.msk.bf16.vlgmr.msra.gmra.mrb[40].mxu1 %vm226_vm0, %v1303_v42  ;;  %v1305_v43 = vsel %vm226_vm0, %v1303_v42, 0 }
0x10a2   : > { %2546 = vmatpush3.bf16.xpose.msra.mxu1 %v1305_v43  ;;  %2547 = vmatprep.mubr.msk.bf16.mxu1 %vm2892_vm1, %v2891_v16 }
0x10a3   : > { %1460 = vmatprep.subr.bf16.mxu1 %v3078_v4 }
0x10a9   : > { %2548 = vmatmul.mubr.msk.bf16.vlgmr.msra.gmra.mrb[44].mxu1 %vm226_vm0, %v1303_v42 }
0x10aa   : > { %1461 = vmatpush1.bf16.xpose.msra.mxu1 %v3080_v8 }
0x10ab   : > { %1462 = vmatprep.subr.bf16.mxu1 %v3082_v9 }
0x10b2   : > { %1463 = vmatpush1.bf16.xpose.msra.mxu1 %v3086_v12 }
0x1174   : > { %v1341_v44 = vpop.f32.mrb[40].mxu1 }
0x1175   : > { %v1343_v45 = vpop.f32.mrb[41].mxu1  ;;  %v1438_v61 = vmul.f32 %v1341_v44, %v3269_v11 }
0x1176   : > { %v1345_v46 = vpop.f32.mrb[42].mxu1  ;;  %v1439_v63 = vmul.f32 %v1343_v45, %v3272_v23 }
0x1177   : > { %v1347_v47 = vpop.f32.mrb[43].mxu1  ;;  %v1440_v13 = vmul.f32 %v1345_v46, %v3274_v25 }
0x1178   : > { %v1441_v3 = vmul.f32 %v1347_v47, %v3276_v26 }
0x117c   : > { %v1384_v48 = vpop.f32.mrb[44].mxu1 }
0x117d   : > { %v2549_v49 = vpop.f32.mrb[45].mxu1 }
0x117e   : > { %v1387_v50 = vpop.f32.mrb[46].mxu1 }
0x117f   : > { %v1391_v51 = vpack.c.bf16 %v1387_v50, %v1384_v48  ;;  %v2550_v52 = vpop.f32.mrb[47].mxu1 }
0x1181   : > { %2444 = vmatmul.mubr.msk.bf16.vlgmr.msra.gmra.mrb[40].mxu0 %vm367_vm2, %v1391_v51 }
0x1182   : > { %2552 = vmatpush3.bf16.msra.mxu0 %v1303_v42  ;;  %2553 = vmatprep.mubr.msk.bf16.mxu0 %vm2892_vm1, %v2891_v16 }
0x1183   : > { %1563 = vmatprep.subr.bf16.mxu0 %v3078_v4 }
0x1254   : > { %v1429_v53 = vpop.f32.mrb[40].mxu0 }
0x1255   : > { %v1430_v54 = vadd.f32 1e-06, %v1429_v53  ;;  %v1431_v55 = vpop.f32.mrb[41].mxu0 }
0x1256   : > { %v1432_v56 = vadd.f32 1e-06, %v1431_v55  ;;  %v1433_v57 = vpop.f32.mrb[42].mxu0 }
0x1257   : > { %2708 = vrcp.f32 %v1430_v54  ;;  %v1434_v58 = vadd.f32 1e-06, %v1433_v57  ;;  %v1435_v59 = vpop.f32.mrb[43].mxu0 }
0x1258   : > { %2710 = vrcp.f32 %v1432_v56  ;;  %v1436_v60 = vadd.f32 1e-06, %v1435_v59 }
0x1259   : > { %2712 = vrcp.f32 %v1434_v58 }
0x125a   : > { %2714 = vrcp.f32 %v1436_v60 }
0x1261   : > { %v2709_v62 = vpop.eup %2708 }
0x1262   : > { %v2711_v1 = vpop.eup %2710  ;;  %v3315_v14 = vmul.f32 %v2709_v62, %v1438_v61 }
0x1263   : > { %v2713_v2 = vpop.eup %2712  ;;  %v3318_v5 = vmul.f32 %v2711_v1, %v1439_v63 }
0x1264   : > { %v2715_v6 = vpop.eup %2714  ;;  %v3320_v7 = vmul.f32 %v2713_v2, %v1440_v13 }
0x1265   : > { %v3322_v10 = vmul.f32 %v2715_v6, %v1441_v3 }
0x1266   : > { %v1450_v17 = vpack.c.bf16 %v3320_v7, %v3315_v14 }
0x1267   : > { %v1451_v11 = vpack.c.bf16 %v3322_v10, %v3318_v5 }
0x1269   : > { %1464 = vmatprep.subr.bf16.mxu1 %v1451_v11  ;;  %1492 = vmatprep.mubr.bf16.mxu1 %v1451_v11 }
0x126a   : > { %1465 = vmatpush1.bf16.xpose.msra.mxu1 %v1450_v17 }
0x126b   : > { %1651 = vmatprep.subr.bf16.mxu1 %v1451_v11 }
0x1271   : > { %1493 = vmatmul.mubr.bf16.vlgmr.msra.gmra.mrb[48].mxu1 %v1450_v17 }
0x1272   : > { %1652 = vmatpush1.bf16.msra.mxu1 %v1450_v17  ;;  %1683 = vmatprep.mubr.bf16.mxu1 %v2890_v0 }
0x1273   : > { %2563 = vmatprep.subr.bf16.mxu1 %v2891_v16 }
0x1344   : > { %v1494_v21 = vpop.f32.mrb[48].mxu1 }
0x1345   : > { %v1496_v23 = vpop.f32.mrb[49].mxu1  ;;  %v1549_v32 = vmul.f32 %v1494_v21, %v3293_v39 }
0x1346   : > { %v1497_v24 = vpop.f32.mrb[50].mxu1 }
0x1347   : > { %v1501_v25 = vpack.c.bf16 %v1497_v24, %v1494_v21  ;;  %v1499_v26 = vpop.f32.mrb[51].mxu1  ;;  %v1550_v33 = vmul.f32 %v1497_v24, %v3295_v41 }
0x1349   : > { %1503 = vrot.lane.b32.xlu0 %v1501_v25, %s2893_s20 }
0x13bb   : > { %v1504_v27 = vpop.permute.xlu0 %1503 }
0x13bc   : > { %2554 = vmatmul.mubr.msk.bf16.vlgmr.msra.gmra.mrb[44].mxu0 %vm367_vm2, %v1504_v27 }
0x13bd   : > { %1564 = vmatpush1.bf16.msra.mxu0 %v3080_v8  ;;  %1595 = vmatprep.mubr.bf16.mxu0 %v2890_v0 }
0x13be   : > { %1565 = vmatprep.subr.bf16.mxu0 %v3082_v9 }
0x13c1   : > { %1566 = vmatpush1.bf16.msra.mxu0 %v3086_v12 }
0x13c2   : > { %2557 = vmatprep.subr.bf16.mxu0 %v2891_v16 }
0x148f   : > { %v1542_v28 = vpop.f32.mrb[44].mxu0 }
0x1490   : > { %v1543_v29 = vadd.f32 1e-06, %v1542_v28  ;;  %v2555_v30 = vpop.f32.mrb[45].mxu0 }
0x1491   : > { %v1545_v31 = vpop.f32.mrb[46].mxu0 }
0x1492   : > { %2716 = vrcp.f32 %v1543_v29  ;;  %v1546_v18 = vadd.f32 1e-06, %v1545_v31  ;;  %v2556_v20 = vpop.f32.mrb[47].mxu0 }
0x1494   : > { %2718 = vrcp.f32 %v1546_v18 }
0x149c   : > { %v2717_v19 = vpop.eup %2716 }
0x149d   : > { %v3339_v22 = vmul.f32 %v2717_v19, %v1549_v32 }
0x149e   : > { %v2719_v34 = vpop.eup %2718 }
0x149f   : > { %v3341_v35 = vmul.f32 %v2719_v34, %v1550_v33 }
0x14a1   : > { %v1559_v36 = vpack.c.bf16 %v3341_v35, %v3339_v22 }
0x14a3   : > { %2446 = vmatmul.mubr.msk.bf16.vlgmr.msra.gmra.mrb[48].mxu0 %vm226_vm0, %v1559_v36  ;;  %v1561_v37 = vsel %vm226_vm0, %v1559_v36, 0 }
0x14a4   : > { %2558 = vmatpush3.bf16.xpose.msra.mxu0 %v1561_v37  ;;  %2559 = vmatprep.mubr.msk.bf16.mxu0 %vm2892_vm1, %v2891_v16 }
0x14a5   : > { %1716 = vmatprep.subr.bf16.mxu0 %v3078_v4 }
0x14ab   : > { %2560 = vmatmul.mubr.msk.bf16.vlgmr.msra.gmra.mrb[52].mxu0 %vm226_vm0, %v1559_v36 }
0x14ac   : > { %1717 = vmatpush1.bf16.xpose.msra.mxu0 %v3080_v8 }
0x14ad   : > { %1718 = vmatprep.subr.bf16.mxu0 %v3082_v9 }
0x14b4   : > { %1719 = vmatpush1.bf16.xpose.msra.mxu0 %v3086_v12 }
0x1576   : > { %v1597_v15 = vpop.f32.mrb[48].mxu0 }
0x1577   : > { %v1599_v38 = vpop.f32.mrb[49].mxu0  ;;  %v1694_v54 = vmul.f32 %v1597_v15, %v3315_v14 }
0x1578   : > { %v1601_v39 = vpop.f32.mrb[50].mxu0  ;;  %v1695_v56 = vmul.f32 %v1599_v38, %v3318_v5 }
0x1579   : > { %v1603_v40 = vpop.f32.mrb[51].mxu0  ;;  %v1696_v58 = vmul.f32 %v1601_v39, %v3320_v7 }
0x157a   : > { %v1697_v61 = vmul.f32 %v1603_v40, %v3322_v10 }
0x157e   : > { %v1640_v41 = vpop.f32.mrb[52].mxu0 }
0x157f   : > { %v2561_v42 = vpop.f32.mrb[53].mxu0 }
0x1580   : > { %v1643_v43 = vpop.f32.mrb[54].mxu0 }
0x1581   : > { %v1647_v44 = vpack.c.bf16 %v1643_v43, %v1640_v41  ;;  %v2562_v45 = vpop.f32.mrb[55].mxu0 }
0x1583   : > { %2448 = vmatmul.mubr.msk.bf16.vlgmr.msra.gmra.mrb[52].mxu1 %vm367_vm2, %v1647_v44 }
0x1584   : > { %2564 = vmatpush3.bf16.msra.mxu1 %v1559_v36  ;;  %2565 = vmatprep.mubr.msk.bf16.mxu1 %vm2892_vm1, %v2891_v16 }
0x1585   : > { %1819 = vmatprep.subr.bf16.mxu1 %v3078_v4 }
0x1656   : > { %v1685_v46 = vpop.f32.mrb[52].mxu1 }
0x1657   : > { %v1686_v47 = vadd.f32 1e-06, %v1685_v46  ;;  %v1687_v48 = vpop.f32.mrb[53].mxu1 }
0x1658   : > { %v1688_v49 = vadd.f32 1e-06, %v1687_v48  ;;  %v1689_v50 = vpop.f32.mrb[54].mxu1 }
0x1659   : > { %2720 = vrcp.f32 %v1686_v47  ;;  %v1690_v51 = vadd.f32 1e-06, %v1689_v50  ;;  %v1691_v52 = vpop.f32.mrb[55].mxu1 }
0x165a   : > { %2722 = vrcp.f32 %v1688_v49  ;;  %v1692_v53 = vadd.f32 1e-06, %v1691_v52 }
0x165b   : > { %2724 = vrcp.f32 %v1690_v51 }
0x165c   : > { %2726 = vrcp.f32 %v1692_v53 }
0x1663   : > { %v2721_v55 = vpop.eup %2720 }
0x1664   : > { %v2723_v57 = vpop.eup %2722  ;;  %v3361_v59 = vmul.f32 %v2721_v55, %v1694_v54 }
0x1665   : > { %v2725_v60 = vpop.eup %2724  ;;  %v3364_v62 = vmul.f32 %v2723_v57, %v1695_v56 }
0x1666   : > { %v2727_v63 = vpop.eup %2726  ;;  %v3366_v1 = vmul.f32 %v2725_v60, %v1696_v58 }
0x1667   : > { %v3368_v13 = vmul.f32 %v2727_v63, %v1697_v61 }
0x1668   : > { %v1706_v2 = vpack.c.bf16 %v3366_v1, %v3361_v59 }
0x1669   : > { %v1707_v14 = vpack.c.bf16 %v3368_v13, %v3364_v62 }
0x166b   : > { %1720 = vmatprep.subr.bf16.mxu0 %v1707_v14  ;;  %1748 = vmatprep.mubr.bf16.mxu0 %v1707_v14 }
0x166c   : > { %1721 = vmatpush1.bf16.xpose.msra.mxu0 %v1706_v2 }
0x166d   : > { %1907 = vmatprep.subr.bf16.mxu0 %v1707_v14 }
0x1673   : > { %1749 = vmatmul.mubr.bf16.vlgmr.msra.gmra.mrb[56].mxu0 %v1706_v2 }
0x1674   : > { %1908 = vmatpush1.bf16.msra.mxu0 %v1706_v2  ;;  %1939 = vmatprep.mubr.bf16.mxu0 %v2890_v0 }
0x1675   : > { %2575 = vmatprep.subr.bf16.mxu0 %v2891_v16 }
0x1746   : > { %v1750_v3 = vpop.f32.mrb[56].mxu0 }
0x1747   : > { %v1752_v5 = vpop.f32.mrb[57].mxu0  ;;  %v1805_v27 = vmul.f32 %v1750_v3, %v3339_v22 }
0x1748   : > { %v1753_v6 = vpop.f32.mrb[58].mxu0 }
0x1749   : > { %v1757_v7 = vpack.c.bf16 %v1753_v6, %v1750_v3  ;;  %v1755_v10 = vpop.f32.mrb[59].mxu0  ;;  %v1806_v29 = vmul.f32 %v1753_v6, %v3341_v35 }
0x174b   : > { %1759 = vrot.lane.b32.xlu1 %v1757_v7, %s2893_s20 }
0x17bd   : > { %v1760_v11 = vpop.permute.xlu1 %1759 }
0x17be   : > { %2566 = vmatmul.mubr.msk.bf16.vlgmr.msra.gmra.mrb[56].mxu1 %vm367_vm2, %v1760_v11 }
0x17bf   : > { %1820 = vmatpush1.bf16.msra.mxu1 %v3080_v8  ;;  %1851 = vmatprep.mubr.bf16.mxu1 %v2890_v0 }
0x17c0   : > { %1821 = vmatprep.subr.bf16.mxu1 %v3082_v9 }
0x17c3   : > { %1822 = vmatpush1.bf16.msra.mxu1 %v3086_v12 }
0x17c4   : > { %2569 = vmatprep.subr.bf16.mxu1 %v2891_v16 }
0x1891   : > { %v1798_v17 = vpop.f32.mrb[56].mxu1 }
0x1892   : > { %v1799_v21 = vadd.f32 1e-06, %v1798_v17  ;;  %v2567_v23 = vpop.f32.mrb[57].mxu1 }
0x1893   : > { %v1801_v24 = vpop.f32.mrb[58].mxu1 }
0x1894   : > { %2728 = vrcp.f32 %v1799_v21  ;;  %v1802_v25 = vadd.f32 1e-06, %v1801_v24  ;;  %v2568_v26 = vpop.f32.mrb[59].mxu1 }
0x1896   : > { %2730 = vrcp.f32 %v1802_v25 }
0x189e   : > { %v2729_v28 = vpop.eup %2728 }
0x189f   : > { %v3385_v30 = vmul.f32 %v2729_v28, %v1805_v27 }
0x18a0   : > { %v2731_v31 = vpop.eup %2730 }
0x18a1   : > { %v3387_v18 = vmul.f32 %v2731_v31, %v1806_v29 }
0x18a3   : > { %v1815_v20 = vpack.c.bf16 %v3387_v18, %v3385_v30 }
0x18a5   : > { %2450 = vmatmul.mubr.msk.bf16.vlgmr.msra.gmra.mrb[60].mxu1 %vm226_vm0, %v1815_v20  ;;  %v1817_v32 = vsel %vm226_vm0, %v1815_v20, 0 }
0x18a6   : > { %2570 = vmatpush3.bf16.xpose.msra.mxu1 %v1817_v32  ;;  %2571 = vmatprep.mubr.msk.bf16.mxu1 %vm2892_vm1, %v2891_v16 }
0x18a7   : > { %1972 = vmatprep.subr.bf16.mxu1 %v3078_v4 }
0x18ad   : > { %2572 = vmatmul.mubr.msk.bf16.vlgmr.msra.gmra.mrb[64].mxu1 %vm226_vm0, %v1815_v20 }
0x18ae   : > { %1973 = vmatpush1.bf16.xpose.msra.mxu1 %v3080_v8 }
0x18af   : > { %1974 = vmatprep.subr.bf16.mxu1 %v3082_v9 }
0x18b6   : > { %1975 = vmatpush1.bf16.xpose.msra.mxu1 %v3086_v12 }
0x1978   : > { %v1853_v19 = vpop.f32.mrb[60].mxu1 }
0x1979   : > { %v1855_v33 = vpop.f32.mrb[61].mxu1  ;;  %v1950_v47 = vmul.f32 %v1853_v19, %v3361_v59 }
0x197a   : > { %v1857_v22 = vpop.f32.mrb[62].mxu1  ;;  %v1951_v49 = vmul.f32 %v1855_v33, %v3364_v62 }
0x197b   : > { %v1859_v34 = vpop.f32.mrb[63].mxu1 }
0x197c   : > { %v1953_v53 = vmul.f32 %v1859_v34, %v3368_v13 }
0x1980   : > { %v1896_v35 = vpop.f32.mrb[64].mxu1 }
0x1981   : > { %v2573_v36 = vpop.f32.mrb[65].mxu1 }
0x1982   : > { %v1899_v37 = vpop.f32.mrb[66].mxu1 }
0x1983   : > { %v1903_v15 = vpack.c.bf16 %v1899_v37, %v1896_v35  ;;  %v2574_v38 = vpop.f32.mrb[67].mxu1 }
0x1985   : > { %2452 = vmatmul.mubr.msk.bf16.vlgmr.msra.gmra.mrb[60].mxu0 %vm367_vm2, %v1903_v15 }
0x1986   : > { %2576 = vmatpush3.bf16.msra.mxu0 %v1815_v20  ;;  %2577 = vmatprep.mubr.msk.bf16.mxu0 %vm2892_vm1, %v2891_v16 }
0x1987   : > { %2075 = vmatprep.subr.bf16.mxu0 %v3078_v4  ;;  %v1952_v4 = vmul.f32 %v1857_v22, %v3366_v1 }
0x1a58   : > { %v1941_v39 = vpop.f32.mrb[60].mxu0 }
0x1a59   : > { %v1942_v40 = vadd.f32 1e-06, %v1941_v39  ;;  %v1943_v41 = vpop.f32.mrb[61].mxu0 }
0x1a5a   : > { %v1944_v42 = vadd.f32 1e-06, %v1943_v41  ;;  %v1945_v43 = vpop.f32.mrb[62].mxu0 }
0x1a5b   : > { %2732 = vrcp.f32 %v1942_v40  ;;  %v1946_v44 = vadd.f32 1e-06, %v1945_v43  ;;  %v1947_v45 = vpop.f32.mrb[63].mxu0 }
0x1a5c   : > { %2734 = vrcp.f32 %v1944_v42  ;;  %v1948_v46 = vadd.f32 1e-06, %v1947_v45 }
0x1a5d   : > { %2736 = vrcp.f32 %v1946_v44 }
0x1a5e   : > { %2738 = vrcp.f32 %v1948_v46 }
0x1a65   : > { %v2733_v48 = vpop.eup %2732 }
0x1a66   : > { %v2735_v50 = vpop.eup %2734  ;;  %v3407_v51 = vmul.f32 %v2733_v48, %v1950_v47 }
0x1a67   : > { %v2737_v52 = vpop.eup %2736  ;;  %v3410_v54 = vmul.f32 %v2735_v50, %v1951_v49 }
0x1a68   : > { %v2739_v55 = vpop.eup %2738  ;;  %v3412_v56 = vmul.f32 %v2737_v52, %v1952_v4 }
0x1a69   : > { %v3414_v57 = vmul.f32 %v2739_v55, %v1953_v53 }
0x1a6a   : > { %v1962_v59 = vpack.c.bf16 %v3412_v56, %v3407_v51 }
0x1a6b   : > { %v1963_v58 = vpack.c.bf16 %v3414_v57, %v3410_v54 }
0x1a6d   : > { %1976 = vmatprep.subr.bf16.mxu1 %v1963_v58  ;;  %2004 = vmatprep.mubr.bf16.mxu1 %v1963_v58 }
0x1a6e   : > { %1977 = vmatpush1.bf16.xpose.msra.mxu1 %v1962_v59 }
0x1a6f   : > { %2163 = vmatprep.subr.bf16.mxu1 %v1963_v58 }
0x1a75   : > { %2005 = vmatmul.mubr.bf16.vlgmr.msra.gmra.mrb[68].mxu1 %v1962_v59 }
0x1a76   : > { %2164 = vmatpush1.bf16.msra.mxu1 %v1962_v59  ;;  %2195 = vmatprep.mubr.bf16.mxu1 %v2890_v0 }
0x1b48   : > { %v2006_v60 = vpop.f32.mrb[68].mxu1 }
0x1b49   : > { %v2008_v61 = vpop.f32.mrb[69].mxu1  ;;  %v2061_v10 = vmul.f32 %v2006_v60, %v3385_v30 }
0x1b4a   : > { %v2009_v62 = vpop.f32.mrb[70].mxu1 }
0x1b4b   : > { %v2013_v63 = vpack.c.bf16 %v2009_v62, %v2006_v60  ;;  %v2011_v1 = vpop.f32.mrb[71].mxu1 }
0x1b4d   : > { %2015 = vrot.lane.b32.xlu0 %v2013_v63, %s2893_s20 }
0x1bbf   : > { %v2016_v13 = vpop.permute.xlu0 %2015 }
0x1bc0   : > { %2578 = vmatmul.mubr.msk.bf16.vlgmr.msra.gmra.mrb[64].mxu0 %vm367_vm2, %v2016_v13 }
0x1bc1   : > { %2076 = vmatpush1.bf16.msra.mxu0 %v3080_v8  ;;  %2107 = vmatprep.mubr.bf16.mxu0 %v2890_v0  ;;  %v2062_v8 = vmul.f32 %v2009_v62, %v3387_v18 }
0x1bc2   : > { %2077 = vmatprep.subr.bf16.mxu0 %v3082_v9 }
0x1bc5   : > { %2078 = vmatpush1.bf16.msra.mxu0 %v3086_v12 }
0x1bc6   : > { %2581 = vmatprep.subr.bf16.mxu0 %v2891_v16 }
0x1c93   : > { %v2054_v14 = vpop.f32.mrb[64].mxu0 }
0x1c94   : > { %v2055_v2 = vadd.f32 1e-06, %v2054_v14  ;;  %v2579_v3 = vpop.f32.mrb[65].mxu0 }
0x1c95   : > { %v2057_v5 = vpop.f32.mrb[66].mxu0 }
0x1c96   : > { %2740 = vrcp.f32 %v2055_v2  ;;  %v2058_v6 = vadd.f32 1e-06, %v2057_v5  ;;  %v2580_v7 = vpop.f32.mrb[67].mxu0 }
0x1c98   : > { %2742 = vrcp.f32 %v2058_v6 }
0x1ca0   : > { %v2741_v11 = vpop.eup %2740 }
0x1ca1   : > { %v2065_v17 = vmul.f32 %v2741_v11, %v2061_v10 }
0x1ca2   : > { %v2743_v21 = vpop.eup %2742 }
0x1ca3   : > { %v2066_v9 = vmul.f32 %v2743_v21, %v2062_v8 }
0x1ca5   : > { %v2071_v23 = vpack.c.bf16 %v2066_v9, %v2065_v17 }
0x1ca7   : > { %2220 = vxpose.xlu1.c.b16.start.end [1/1] (short) (narrow) %v2071_v23, 32  ;;  %2454 = vmatmul.mubr.msk.bf16.vlgmr.msra.gmra.mrb[68].mxu0 %vm226_vm0, %v2071_v23  ;;  %v2073_v12 = vsel %vm226_vm0, %v2071_v23, 0 }
0x1ca8   : > { %2582 = vmatpush3.bf16.xpose.msra.mxu0 %v2073_v12  ;;  %2583 = vmatprep.mubr.msk.bf16.mxu0 %vm2892_vm1, %v2891_v16 }
0x1caf   : > { %2584 = vmatmul.mubr.msk.bf16.vlgmr.msra.gmra.mrb[72].mxu0 %vm226_vm0, %v2071_v23 }
0x1cb0   : > { %2274 = vmatprep.mubr.bf16.mxu0 %v2890_v0 }
0x1d0d   : > { %v2228_v49 = vpop.trf.xlu1 }
0x1d11   : > { %v2229_v50 = vpop.trf.xlu1 }
0x1d7a   : > { %v2109_v24 = vpop.f32.mrb[68].mxu0 }
0x1d7b   : > { %v2111_v25 = vpop.f32.mrb[69].mxu0  ;;  %v2206_v36 = vmul.f32 %v2109_v24, %v3407_v51 }
0x1d7c   : > { %v2113_v26 = vpop.f32.mrb[70].mxu0  ;;  %v2207_v15 = vmul.f32 %v2111_v25, %v3410_v54 }
0x1d7d   : > { %v2115_v27 = vpop.f32.mrb[71].mxu0  ;;  %v2208_v39 = vmul.f32 %v2113_v26, %v3412_v56 }
0x1d7e   : > { %v2209_v42 = vmul.f32 %v2115_v27, %v3414_v57 }
0x1d82   : > { %v2152_v28 = vpop.f32.mrb[72].mxu0 }
0x1d83   : > { %v2585_v29 = vpop.f32.mrb[73].mxu0 }
0x1d84   : > { %v2155_v30 = vpop.f32.mrb[74].mxu0 }
0x1d85   : > { %v2159_v31 = vpack.c.bf16 %v2155_v30, %v2152_v28  ;;  %v2586_v18 = vpop.f32.mrb[75].mxu0 }
0x1d87   : > { %2456 = vmatmul.mubr.msk.bf16.vlgmr.msra.gmra.mrb[72].mxu1 %vm367_vm2, %v2159_v31 }
0x1e5a   : > { %v2197_v20 = vpop.f32.mrb[72].mxu1 }
0x1e5b   : > { %v2198_v32 = vadd.f32 1e-06, %v2197_v20  ;;  %v2199_v19 = vpop.f32.mrb[73].mxu1 }
0x1e5c   : > { %v2200_v33 = vadd.f32 1e-06, %v2199_v19  ;;  %v2201_v16 = vpop.f32.mrb[74].mxu1 }
0x1e5d   : > { %2744 = vrcp.f32 %v2198_v32  ;;  %v2202_v22 = vadd.f32 1e-06, %v2201_v16  ;;  %v2203_v34 = vpop.f32.mrb[75].mxu1 }
0x1e5e   : > { %2746 = vrcp.f32 %v2200_v33  ;;  %v2204_v35 = vadd.f32 1e-06, %v2203_v34 }
0x1e5f   : > { %2748 = vrcp.f32 %v2202_v22 }
0x1e60   : > { %2750 = vrcp.f32 %v2204_v35 }
0x1e67   : > { %v2745_v37 = vpop.eup %2744 }
0x1e68   : > { %v2747_v38 = vpop.eup %2746  ;;  %v2211_v40 = vmul.f32 %v2745_v37, %v2206_v36 }
0x1e69   : > { %v2749_v41 = vpop.eup %2748  ;;  %v2213_v43 = vmul.f32 %v2747_v38, %v2207_v15 }
0x1e6a   : > { %v2751_v44 = vpop.eup %2750  ;;  %v2215_v45 = vmul.f32 %v2749_v41, %v2208_v39 }
0x1e6b   : > { %v2217_v46 = vmul.f32 %v2751_v44, %v2209_v42 }
0x1e6c   : > { %v2218_v47 = vpack.c.bf16 %v2215_v45, %v2211_v40 }
0x1e6d   : > { %v2219_v48 = vpack.c.bf16 %v2217_v46, %v2213_v43 }
0x1e6f   : > { %2242 = vmatprep.subr.bf16.mxu0 %v2219_v48 }
0x1e70   : > { %2243 = vmatpush1.bf16.msra.mxu0 %v2218_v47 }
0x1e73   : > { %2457 = vmatmul.mubr.msk.bf16.vlgmr.msra.gmra.mrb[76].mxu0 %vm367_vm2, %v2228_v49 }
0x1e74   : > { %2284 = vmatprep.mubr.bf16.mxu0 %v2890_v0 }
0x1e7b   : > { %2458 = vmatmul.mubr.msk.bf16.gmra.mrb[80].mxu0 %vm367_vm2, %v2229_v50 }
0x1f46   : > { %v2276_v4 = vpop.f32.mrb[76].mxu0 }
0x1f47   : > { %2295 = vst [vmem:[%s201_s8] sm:$0xff] %v2276_v4  ;;  %v2278_v51 = vpop.f32.mrb[77].mxu0 }
0x1f48   : > { %2296 = vst [vmem:[%s201_s8 + $0x8] sm:$0xff] %v2278_v51  ;;  %v2280_v52 = vpop.f32.mrb[78].mxu0 }
0x1f49   : > { %2297 = vst [vmem:[%s201_s8 + $0x10] sm:$0xff] %v2280_v52  ;;  %v2282_v53 = vpop.f32.mrb[79].mxu0 }
0x1f4a   : > { %2298 = vst [vmem:[%s201_s8 + $0x18] sm:$0xff] %v2282_v53 }
0x1f4e   : > { %v2286_v0 = vpop.f32.mrb[80].mxu0 }
0x1f4f   : > { %2299 = vst [vmem:[%s201_s8 + $0x20] sm:$0xff] %v2286_v0  ;;  %v2288_v54 = vpop.f32.mrb[81].mxu0 }
0x1f50   : > { %2300 = vst [vmem:[%s201_s8 + $0x28] sm:$0xff] %v2288_v54  ;;  %v2290_v55 = vpop.f32.mrb[82].mxu0 }
0x1f51   : > { %2301 = vst [vmem:[%s201_s8 + $0x30] sm:$0xff] %v2290_v55  ;;  %v2292_v56 = vpop.f32.mrb[83].mxu0 }
0x1f52   : > { %2302 = vst [vmem:[%s201_s8 + $0x38] sm:$0xff] %v2292_v56 }
0x1f53   : > { %2825 = shalt.err (!%p2822_p3)
}
0x1f54   : > { %s2826_s16 = scalar_lea.hbm %s3452_s27, 1024  ;;  %s2830_s24 = scalar_lea.hbm %s3498_s2, 2048 }
0x1f55   : > { %p2827_p12 = scmp.ne.s32.totalorder %s3452_s27, %s2826_s16  ;;  %p2831_p2 = scmp.lt.u32.totalorder %s3452_s27, %s3498_s2 }
0x1f56   : > { %p2832_p4 = scmp.lt.u32.totalorder %s2830_s24, %s2826_s16  ;;  %p2834_p13 = scmp.lt.u32.totalorder %s2826_s16, %s3452_s27 }
0x1f57   : > { %p2828_p8 = pnand %p2827_p12, %p3508_p1 }
0x1f58   : > { %p2833_p6 = por %p2832_p4, %p2831_p2 }
0x1f59   : > { %p2829_p0 = pneg %p2828_p8 }
0x1f5a   : > { %p2835_p11 = por %p2834_p13, %p2833_p6 }
0x1f5c   : > { %p2836_p10 = pnand %p2835_p11, %p2829_p0 }
0x1f5e   : > { %2839 = shalt.err (!%p2836_p10)
}
0x1f5f   : > { %s2895_s5 = smov 256   ;;  %s2896_s20 = smov 16  }
0x1f60   : > { %2591 = dma.vmem_to_hbm [thread:$0]  (%p3508_p1), %s3447_s17, 1024, %s3452_s27, %s2304_s29, %s2895_s5, %s2895_s5, %s2896_s20  }
0x1f61 PF: > { %s2332_s8 = sand.u32 1, %s2870_s9   ;;  %p3509_p5 = scmp.ne.s32.totalorder %s3504_s22, 0 }
0x1f62   : > { %p3510_p7 = scmp.ge.s32.totalorder %s2882_s12, 2  ;;  %s2333_s28 = scalar_lea.sflag [#allocation5], %s2332_s8 }
0x1f64   : > { %p2601_p9 = pnand %p3510_p7, %p3509_p5 }
0x1f66   : > { %2865 = dma.done.wait (!%p2601_p9), %s2333_s28, 1024  }
0x1f67   : > { %2867 = vsyncadd (!%p2601_p9), %s2333_s28, 4294966272  ;;  %p18_p3 = scmp.ge.s32.totalorder %s2937_s15, 4   ;;  %s3511_s9 = smov %s2874_s10 }
0x1f68   : > { %s3512_s10 = smov %s2878_s11  ;;  %s3513_s11 = smov %s2949_s18 }
0x1f69   : > { %s3514_s12 = smov %s2937_s15  ;;  %20 = sbr.rel (!%p18_p3) target bundleno = 7 (0x7), region = 86 }
0x1f70   :  { %2338 = vsyncpa [#allocation4], 1 }
0x1f71   :  { %2340 = vsyncpa [#allocation4 + $0x1], 1 }
0x1f72   :  { %2341 = vsyncpa [#allocation7], 1 }
0x1f73   :  { %2343 = vsyncpa [#allocation7 + $0x1], 1 }
0x1f74   :  { %2344 = vsyncpa [#allocation5], 1 }
0x1f75   :  { %2346 = vsyncpa [#allocation5 + $0x1], 1 }

</bundles_post_ra>
